<compile_context>
chip_gen: v7x
topology: tpu7x:2x2x1
jax: 0.10.0
libtpu: 0.0.40
codegen_flags: <defaults>
</compile_context>

<pallas_src>
import functools

import numpy as np
import jax
import jax.numpy as jnp
from jax import lax
from jax.experimental import pallas as pl
from jax.experimental.pallas import tpu as pltpu


def _make_w_band(wt, Wp, W):
    """Per-tap DHWIO weight (K,K,K,Ci,Co) -> W-banded weight (K*K, Wp*Ci, W*Co).

    band[kd*K+kh, (w+kw)*Ci + ci, w*Co + co] = wt[kd, kh, kw, ci, co]
    so a dot of the flattened (D*H, Wp*Ci) input slab against the band does
    the whole W-window contraction for one (kd, kh) tap.
    """
    K = wt.shape[0]
    Ci, Co = wt.shape[3], wt.shape[4]
    sel = np.zeros((K, Wp, W), np.float32)
    for kw in range(K):
        sel[kw, kw:kw + W, :] = np.eye(W, dtype=np.float32)
    band = jnp.einsum('kpw,abkio->abpiwo', jnp.asarray(sel), wt)
    return band.reshape(K * K, Wp * Ci, W * Co)


def _convgru_kernel(K, D, H, W, Cin, Ch, p,
                    xp_ref, h_ref, wx_ref, wh_ref, wc_ref, b_ref,
                    o_ref, hpad_ref):
    """Fused ConvGRU cell, one batch element per grid step.

    xp_ref  : (Dp, Hp, Wp*Cin)   zero-padded x, minor dims flattened
    h_ref   : (D*H, W*Ch)        h_cur
    wx_ref  : (K*K, Wp*Cin, 3*W*Ch)   banded x-half weights [gamma|beta|cand]
    wh_ref  : (K*K, Wp*Ch, 2*W*Ch)    banded h-half gate weights [gamma|beta]
    wc_ref  : (K*K, Wp*Ch, W*Ch)      banded h-half candidate weights
    b_ref   : (3, W*Ch)          per-W-tiled biases [gamma, beta, cand]
    o_ref   : (D*H, W*Ch)        h_next
    hpad_ref: (Dp, Hp, Wp*Ch)    VMEM scratch: padded h, then padded reset*h
    """
    DH = D * H
    WCh = W * Ch
    WpCin = xp_ref.shape[-1]
    WpCh = hpad_ref.shape[-1]
    f32 = jnp.float32

    # Stage zero-padded h into the VMEM scratch (the zero halo IS the conv's
    # 'SAME' padding).  Re-zeroed every step -> safe under megacore sharding.
    hpad_ref[...] = jnp.zeros_like(hpad_ref)
    h_blk = h_ref[...].astype(f32)                          # (DH, W*Ch)
    hpad_ref[p:p + D, p:p + H, p * Ch:(p + W) * Ch] = h_blk.reshape(D, H, WCh)

    # Pass 1: gates conv (gamma|beta) + the x-half of the candidate conv.
    acc_x = jnp.zeros((DH, 3 * WCh), f32)
    acc_h = jnp.zeros((DH, 2 * WCh), f32)
    for kd in range(K):
        for kh in range(K):
            t = kd * K + kh
            xs = xp_ref[kd:kd + D, kh:kh + H, :].reshape(DH, WpCin)
            hs = hpad_ref[kd:kd + D, kh:kh + H, :].reshape(DH, WpCh)
            acc_x = acc_x + jnp.dot(xs, wx_ref[t], preferred_element_type=f32)
            acc_h = acc_h + jnp.dot(hs, wh_ref[t], preferred_element_type=f32)

    gamma = acc_x[:, :WCh] + acc_h[:, :WCh] + b_ref[0:1, :]
    beta = acc_x[:, WCh:2 * WCh] + acc_h[:, WCh:] + b_ref[1:2, :]
    reset = jax.nn.sigmoid(gamma)
    update = jax.nn.sigmoid(beta)

    # reset*h stays on-chip: overwrite the scratch interior (halo stays zero).
    hpad_ref[p:p + D, p:p + H, p * Ch:(p + W) * Ch] = (
        reset * h_blk).reshape(D, H, WCh)

    # Pass 2: h-half of the candidate conv (x-half already in acc_x[:, 2*WCh:]).
    acc_c = acc_x[:, 2 * WCh:]
    for kd in range(K):
        for kh in range(K):
            t = kd * K + kh
            hs = hpad_ref[kd:kd + D, kh:kh + H, :].reshape(DH, WpCh)
            acc_c = acc_c + jnp.dot(hs, wc_ref[t], preferred_element_type=f32)

    cnm = jnp.tanh(acc_c + b_ref[2:3, :])
    # h_next = u*cnm + (1-u)*h  ==  h + u*(cnm - h)
    o_ref[...] = (h_blk + update * (cnm - h_blk)).astype(o_ref.dtype)


def conv_gru_cell_forward(x, h, wg, bg, wc, bc, kernel_size):
    """ConvGRUCell.forward (class_wise=False), NDHWC layout.

    x : (B, D, H, W, Cin)   float32
    h : (B, D, H, W, Ch)    float32
    wg: (K, K, K, Cin+Ch, 2*Ch)   conv_gates weight (DHWIO)
    bg: (2*Ch,)                   conv_gates bias
    wc: (K, K, K, Cin+Ch, Ch)     conv_can weight (DHWIO)
    bc: (Ch,)                     conv_can bias
    """
    B, D, H, W, Cin = x.shape
    Ch = h.shape[-1]
    K = kernel_size
    p = K // 2
    Dp, Hp, Wp = D + 2 * p, H + 2 * p, W + 2 * p
    DH, WCh = D * H, W * Ch

    # Split the concatenated-input convs into x / h halves (no cat([x,h]) in
    # HBM) and band them over W (deep contraction, one dot per (kd,kh) tap).
    wg_x, wg_h = wg[..., :Cin, :], wg[..., Cin:, :]
    wc_x, wc_h = wc[..., :Cin, :], wc[..., Cin:, :]

    wx_band = jnp.concatenate(
        [_make_w_band(wg_x[..., :Ch], Wp, W),    # gamma, x half
         _make_w_band(wg_x[..., Ch:], Wp, W),    # beta,  x half
         _make_w_band(wc_x, Wp, W)],             # candidate, x half
        axis=-1)                                 # (K*K, Wp*Cin, 3*W*Ch)
    wh_band = jnp.concatenate(
        [_make_w_band(wg_h[..., :Ch], Wp, W),    # gamma, h half
         _make_w_band(wg_h[..., Ch:], Wp, W)],   # beta,  h half
        axis=-1)                                 # (K*K, Wp*Ch, 2*W*Ch)
    wc_band = _make_w_band(wc_h, Wp, W)          # (K*K, Wp*Ch, W*Ch)

    bias = jnp.stack([jnp.tile(bg[:Ch], W),
                      jnp.tile(bg[Ch:], W),
                      jnp.tile(bc, W)], axis=0)  # (3, W*Ch)

    # Pad x once (zero halo); flatten minor dims -> lane-dense 2/3-D blocks.
    xp = jnp.pad(x, ((0, 0), (p, p), (p, p), (p, p), (0, 0)))
    xp = xp.reshape(B, Dp, Hp, Wp * Cin)
    h2 = h.reshape(B, DH, WCh)

    spec_xp = pl.BlockSpec((None, Dp, Hp, Wp * Cin), lambda b: (b, 0, 0, 0))
    spec_h = pl.BlockSpec((None, DH, WCh), lambda b: (b, 0, 0))
    spec_wx = pl.BlockSpec(wx_band.shape, lambda b: (0, 0, 0))
    spec_wh = pl.BlockSpec(wh_band.shape, lambda b: (0, 0, 0))
    spec_wc = pl.BlockSpec(wc_band.shape, lambda b: (0, 0, 0))
    spec_bias = pl.BlockSpec(bias.shape, lambda b: (0, 0))
    spec_out = pl.BlockSpec((None, DH, WCh), lambda b: (b, 0, 0))

    fused = pl.pallas_call(
        functools.partial(_convgru_kernel, K, D, H, W, Cin, Ch, p),
        grid=(B,),
        in_specs=[spec_xp, spec_h, spec_wx, spec_wh, spec_wc, spec_bias],
        out_specs=spec_out,
        out_shape=jax.ShapeDtypeStruct((B, DH, WCh), x.dtype),
        scratch_shapes=[pltpu.VMEM((Dp, Hp, Wp * Ch), jnp.float32)],
        compiler_params=pltpu.CompilerParams(
            dimension_semantics=("parallel",)),
    )
    out = fused(xp, h2, wx_band, wh_band, wc_band, bias)
    return out.reshape(B, D, H, W, Ch)


# ---------------- pure-JAX reference (for correctness check) ----------------
def _conv3d_ref(x, w, b):
    out = lax.conv_general_dilated(
        x, w, window_strides=(1, 1, 1), padding="SAME",
        dimension_numbers=("NDHWC", "DHWIO", "NDHWC"))
    return out + b


def convgru_ref(x, h, wg, bg, wc, bc):
    Ch = h.shape[-1]
    comb = jnp.concatenate([x, h], axis=-1)
    cc = _conv3d_ref(comb, wg, bg)
    gamma, beta = cc[..., :Ch], cc[..., Ch:]
    reset = jax.nn.sigmoid(gamma)
    update = jax.nn.sigmoid(beta)
    comb2 = jnp.concatenate([x, reset * h], axis=-1)
    cnm = jnp.tanh(_conv3d_ref(comb2, wc, bc))
    return update * cnm + (1.0 - update) * h


if __name__ == "__main__":
    # ConvGRUCell(input_size=(4, 8, 8), input_dim=4, hidden_dim=8,
    #             kernel_size=3, class_wise=False, bias=True)
    B, Cin, Ch = 2, 4, 8
    D, H, W = 4, 8, 8
    K = 3

    key = jax.random.PRNGKey(0)
    k1, k2, k3, k4, k5, k6 = jax.random.split(key, 6)
    fan_in = (Cin + Ch) * K ** 3
    bound = 1.0 / (fan_in ** 0.5)  # mimic PyTorch Conv3d default init range

    x = jax.random.normal(k1, (B, D, H, W, Cin), jnp.float32)
    h = jax.random.normal(k2, (B, D, H, W, Ch), jnp.float32)
    wg = jax.random.uniform(k3, (K, K, K, Cin + Ch, 2 * Ch), jnp.float32,
                            -bound, bound)
    bg = jax.random.uniform(k4, (2 * Ch,), jnp.float32, -bound, bound)
    wc = jax.random.uniform(k5, (K, K, K, Cin + Ch, Ch), jnp.float32,
                            -bound, bound)
    bc = jax.random.uniform(k6, (Ch,), jnp.float32, -bound, bound)

    fwd = jax.jit(functools.partial(conv_gru_cell_forward, kernel_size=K))
    h_next = fwd(x, h, wg, bg, wc, bc)
    h_next = jax.block_until_ready(h_next)

    ref = convgru_ref(x, h, wg, bg, wc, bc)
    assert h_next.shape == (B, D, H, W, Ch)
    max_err = float(jnp.max(jnp.abs(h_next - ref)))
    assert max_err < 1e-4, f"mismatch vs reference: {max_err}"

    print("KERNEL_OK")
</pallas_src>

<mosaic_0001>
module attributes {stable_mosaic.version = 11 : i64} {
  func.func @_convgru_kernel(%arg0: i32, %arg1: memref<1x6x10x40xf32, #tpu.memory_space<vmem>>, %arg2: memref<1x32x64xf32, #tpu.memory_space<vmem>>, %arg3: memref<9x40x192xf32, #tpu.memory_space<vmem>>, %arg4: memref<9x80x128xf32, #tpu.memory_space<vmem>>, %arg5: memref<9x80x64xf32, #tpu.memory_space<vmem>>, %arg6: memref<3x64xf32, #tpu.memory_space<vmem>>, %arg7: memref<1x32x64xf32, #tpu.memory_space<vmem>>, %arg8: memref<6x10x80xf32, #tpu.memory_space<vmem>>) attributes {dimension_semantics = [#tpu.dimension_semantics<parallel>], iteration_bounds = array<i64: 2>, scalar_prefetch = 0 : i64, scratch_operands = 1 : i64, tpu.core_type = #tpu.core_type<tc>, window_params = [{transform_indices = @transform_0, window_bounds = array<i64: 1, 6, 10, 40>}, {transform_indices = @transform_1, window_bounds = array<i64: 1, 32, 64>}, {pipeline_mode = #tpu.pipeline_mode<synchronous>, transform_indices = @transform_2, window_bounds = array<i64: 9, 40, 192>}, {pipeline_mode = #tpu.pipeline_mode<synchronous>, transform_indices = @transform_3, window_bounds = array<i64: 9, 80, 128>}, {pipeline_mode = #tpu.pipeline_mode<synchronous>, transform_indices = @transform_4, window_bounds = array<i64: 9, 80, 64>}, {pipeline_mode = #tpu.pipeline_mode<synchronous>, transform_indices = @transform_5, window_bounds = array<i64: 3, 64>}, {transform_indices = @transform_6, window_bounds = array<i64: 1, 32, 64>}]} {
    %cst = arith.constant 0.000000e+00 : f32
    %0 = vector.broadcast %cst : f32 to vector<6x10x80xf32>
    %c0 = arith.constant 0 : index
    %c0_0 = arith.constant 0 : index
    %c0_1 = arith.constant 0 : index
    %1 = vector.load %arg8[%c0, %c0_0, %c0_1] : memref<6x10x80xf32, #tpu.memory_space<vmem>>, vector<6x10x80xf32>
    tpu.vector_store %arg8[%c0, %c0_0, %c0_1], %0 {strides = array<i32>} : memref<6x10x80xf32, #tpu.memory_space<vmem>>, vector<6x10x80xf32>,
    %c0_2 = arith.constant 0 : index
    %c0_3 = arith.constant 0 : index
    %c0_4 = arith.constant 0 : index
    %2 = vector.load %arg2[%c0_2, %c0_3, %c0_4] : memref<1x32x64xf32, #tpu.memory_space<vmem>>, vector<1x32x64xf32>
    %3 = vector.shape_cast %2 : vector<1x32x64xf32> to vector<32x64xf32>
    %4 = vector.shape_cast %3 : vector<32x64xf32> to vector<4x8x64xf32>
    %c1 = arith.constant 1 : index
    %c1_5 = arith.constant 1 : index
    %c8 = arith.constant 8 : index
    %5 = vector.load %arg8[%c1, %c1_5, %c8] : memref<6x10x80xf32, #tpu.memory_space<vmem>>, vector<4x8x64xf32>
    tpu.vector_store %arg8[%c1, %c1_5, %c8], %4 {strides = array<i32>} : memref<6x10x80xf32, #tpu.memory_space<vmem>>, vector<4x8x64xf32>,
    %cst_6 = arith.constant 0.000000e+00 : f32
    %6 = vector.broadcast %cst_6 : f32 to vector<32x192xf32>
    %cst_7 = arith.constant 0.000000e+00 : f32
    %7 = vector.broadcast %cst_7 : f32 to vector<32x128xf32>
    %c0_8 = arith.constant 0 : index
    %c0_9 = arith.constant 0 : index
    %c0_10 = arith.constant 0 : index
    %c0_11 = arith.constant 0 : index
    %8 = vector.load %arg1[%c0_8, %c0_9, %c0_10, %c0_11] : memref<1x6x10x40xf32, #tpu.memory_space<vmem>>, vector<1x4x8x40xf32>
    %9 = vector.shape_cast %8 : vector<1x4x8x40xf32> to vector<4x8x40xf32>
    %10 = vector.shape_cast %9 : vector<4x8x40xf32> to vector<32x40xf32>
    %c0_12 = arith.constant 0 : index
    %c0_13 = arith.constant 0 : index
    %c0_14 = arith.constant 0 : index
    %11 = vector.load %arg8[%c0_12, %c0_13, %c0_14] : memref<6x10x80xf32, #tpu.memory_space<vmem>>, vector<4x8x80xf32>
    %12 = vector.shape_cast %11 : vector<4x8x80xf32> to vector<32x80xf32>
    %c0_15 = arith.constant 0 : index
    %c0_16 = arith.constant 0 : index
    %c0_17 = arith.constant 0 : index
    %13 = vector.load %arg3[%c0_15, %c0_16, %c0_17] : memref<9x40x192xf32, #tpu.memory_space<vmem>>, vector<1x40x192xf32>
    %14 = vector.shape_cast %13 : vector<1x40x192xf32> to vector<40x192xf32>
    %cst_18 = arith.constant dense<0.000000e+00> : vector<32x192xf32>
    %15 = tpu.matmul %10, %14, %cst_18 {dimension_numbers = #tpu.dot_dimension_numbers<[1], [0], [0], [1], [0, 0, 1, 1], [], []>} : vector<32x40xf32>, vector<40x192xf32>, vector<32x192xf32> -> vector<32x192xf32>
    %16 = arith.addf %6, %15 : vector<32x192xf32>
    %c0_19 = arith.constant 0 : index
    %c0_20 = arith.constant 0 : index
    %c0_21 = arith.constant 0 : index
    %17 = vector.load %arg4[%c0_19, %c0_20, %c0_21] : memref<9x80x128xf32, #tpu.memory_space<vmem>>, vector<1x80x128xf32>
    %18 = vector.shape_cast %17 : vector<1x80x128xf32> to vector<80x128xf32>
    %cst_22 = arith.constant dense<0.000000e+00> : vector<32x128xf32>
    %19 = tpu.matmul %12, %18, %cst_22 {dimension_numbers = #tpu.dot_dimension_numbers<[1], [0], [0], [1], [0, 0, 1, 1], [], []>} : vector<32x80xf32>, vector<80x128xf32>, vector<32x128xf32> -> vector<32x128xf32>
    %20 = arith.addf %7, %19 : vector<32x128xf32>
    %c0_23 = arith.constant 0 : index
    %c0_24 = arith.constant 0 : index
    %c1_25 = arith.constant 1 : index
    %c0_26 = arith.constant 0 : index
    %21 = vector.load %arg1[%c0_23, %c0_24, %c1_25, %c0_26] : memref<1x6x10x40xf32, #tpu.memory_space<vmem>>, vector<1x4x8x40xf32>
    %22 = vector.shape_cast %21 : vector<1x4x8x40xf32> to vector<4x8x40xf32>
    %23 = vector.shape_cast %22 : vector<4x8x40xf32> to vector<32x40xf32>
    %c0_27 = arith.constant 0 : index
    %c1_28 = arith.constant 1 : index
    %c0_29 = arith.constant 0 : index
    %24 = vector.load %arg8[%c0_27, %c1_28, %c0_29] : memref<6x10x80xf32, #tpu.memory_space<vmem>>, vector<4x8x80xf32>
    %25 = vector.shape_cast %24 : vector<4x8x80xf32> to vector<32x80xf32>
    %c1_30 = arith.constant 1 : index
    %c0_31 = arith.constant 0 : index
    %c0_32 = arith.constant 0 : index
    %26 = vector.load %arg3[%c1_30, %c0_31, %c0_32] : memref<9x40x192xf32, #tpu.memory_space<vmem>>, vector<1x40x192xf32>
    %27 = vector.shape_cast %26 : vector<1x40x192xf32> to vector<40x192xf32>
    %cst_33 = arith.constant dense<0.000000e+00> : vector<32x192xf32>
    %28 = tpu.matmul %23, %27, %cst_33 {dimension_numbers = #tpu.dot_dimension_numbers<[1], [0], [0], [1], [0, 0, 1, 1], [], []>} : vector<32x40xf32>, vector<40x192xf32>, vector<32x192xf32> -> vector<32x192xf32>
    %29 = arith.addf %16, %28 : vector<32x192xf32>
    %c1_34 = arith.constant 1 : index
    %c0_35 = arith.constant 0 : index
    %c0_36 = arith.constant 0 : index
    %30 = vector.load %arg4[%c1_34, %c0_35, %c0_36] : memref<9x80x128xf32, #tpu.memory_space<vmem>>, vector<1x80x128xf32>
    %31 = vector.shape_cast %30 : vector<1x80x128xf32> to vector<80x128xf32>
    %cst_37 = arith.constant dense<0.000000e+00> : vector<32x128xf32>
    %32 = tpu.matmul %25, %31, %cst_37 {dimension_numbers = #tpu.dot_dimension_numbers<[1], [0], [0], [1], [0, 0, 1, 1], [], []>} : vector<32x80xf32>, vector<80x128xf32>, vector<32x128xf32> -> vector<32x128xf32>
    %33 = arith.addf %20, %32 : vector<32x128xf32>
    %c0_38 = arith.constant 0 : index
    %c0_39 = arith.constant 0 : index
    %c2 = arith.constant 2 : index
    %c0_40 = arith.constant 0 : index
    %34 = vector.load %arg1[%c0_38, %c0_39, %c2, %c0_40] : memref<1x6x10x40xf32, #tpu.memory_space<vmem>>, vector<1x4x8x40xf32>
    %35 = vector.shape_cast %34 : vector<1x4x8x40xf32> to vector<4x8x40xf32>
    %36 = vector.shape_cast %35 : vector<4x8x40xf32> to vector<32x40xf32>
    %c0_41 = arith.constant 0 : index
    %c2_42 = arith.constant 2 : index
    %c0_43 = arith.constant 0 : index
    %37 = vector.load %arg8[%c0_41, %c2_42, %c0_43] : memref<6x10x80xf32, #tpu.memory_space<vmem>>, vector<4x8x80xf32>
    %38 = vector.shape_cast %37 : vector<4x8x80xf32> to vector<32x80xf32>
    %c2_44 = arith.constant 2 : index
    %c0_45 = arith.constant 0 : index
    %c0_46 = arith.constant 0 : index
    %39 = vector.load %arg3[%c2_44, %c0_45, %c0_46] : memref<9x40x192xf32, #tpu.memory_space<vmem>>, vector<1x40x192xf32>
    %40 = vector.shape_cast %39 : vector<1x40x192xf32> to vector<40x192xf32>
    %cst_47 = arith.constant dense<0.000000e+00> : vector<32x192xf32>
    %41 = tpu.matmul %36, %40, %cst_47 {dimension_numbers = #tpu.dot_dimension_numbers<[1], [0], [0], [1], [0, 0, 1, 1], [], []>} : vector<32x40xf32>, vector<40x192xf32>, vector<32x192xf32> -> vector<32x192xf32>
    %42 = arith.addf %29, %41 : vector<32x192xf32>
    %c2_48 = arith.constant 2 : index
    %c0_49 = arith.constant 0 : index
    %c0_50 = arith.constant 0 : index
    %43 = vector.load %arg4[%c2_48, %c0_49, %c0_50] : memref<9x80x128xf32, #tpu.memory_space<vmem>>, vector<1x80x128xf32>
    %44 = vector.shape_cast %43 : vector<1x80x128xf32> to vector<80x128xf32>
    %cst_51 = arith.constant dense<0.000000e+00> : vector<32x128xf32>
    %45 = tpu.matmul %38, %44, %cst_51 {dimension_numbers = #tpu.dot_dimension_numbers<[1], [0], [0], [1], [0, 0, 1, 1], [], []>} : vector<32x80xf32>, vector<80x128xf32>, vector<32x128xf32> -> vector<32x128xf32>
    %46 = arith.addf %33, %45 : vector<32x128xf32>
    %c0_52 = arith.constant 0 : index
    %c1_53 = arith.constant 1 : index
    %c0_54 = arith.constant 0 : index
    %c0_55 = arith.constant 0 : index
    %47 = vector.load %arg1[%c0_52, %c1_53, %c0_54, %c0_55] : memref<1x6x10x40xf32, #tpu.memory_space<vmem>>, vector<1x4x8x40xf32>
    %48 = vector.shape_cast %47 : vector<1x4x8x40xf32> to vector<4x8x40xf32>
    %49 = vector.shape_cast %48 : vector<4x8x40xf32> to vector<32x40xf32>
    %c1_56 = arith.constant 1 : index
    %c0_57 = arith.constant 0 : index
    %c0_58 = arith.constant 0 : index
    %50 = vector.load %arg8[%c1_56, %c0_57, %c0_58] : memref<6x10x80xf32, #tpu.memory_space<vmem>>, vector<4x8x80xf32>
    %51 = vector.shape_cast %50 : vector<4x8x80xf32> to vector<32x80xf32>
    %c3 = arith.constant 3 : index
    %c0_59 = arith.constant 0 : index
    %c0_60 = arith.constant 0 : index
    %52 = vector.load %arg3[%c3, %c0_59, %c0_60] : memref<9x40x192xf32, #tpu.memory_space<vmem>>, vector<1x40x192xf32>
    %53 = vector.shape_cast %52 : vector<1x40x192xf32> to vector<40x192xf32>
    %cst_61 = arith.constant dense<0.000000e+00> : vector<32x192xf32>
    %54 = tpu.matmul %49, %53, %cst_61 {dimension_numbers = #tpu.dot_dimension_numbers<[1], [0], [0], [1], [0, 0, 1, 1], [], []>} : vector<32x40xf32>, vector<40x192xf32>, vector<32x192xf32> -> vector<32x192xf32>
    %55 = arith.addf %42, %54 : vector<32x192xf32>
    %c3_62 = arith.constant 3 : index
    %c0_63 = arith.constant 0 : index
    %c0_64 = arith.constant 0 : index
    %56 = vector.load %arg4[%c3_62, %c0_63, %c0_64] : memref<9x80x128xf32, #tpu.memory_space<vmem>>, vector<1x80x128xf32>
    %57 = vector.shape_cast %56 : vector<1x80x128xf32> to vector<80x128xf32>
    %cst_65 = arith.constant dense<0.000000e+00> : vector<32x128xf32>
    %58 = tpu.matmul %51, %57, %cst_65 {dimension_numbers = #tpu.dot_dimension_numbers<[1], [0], [0], [1], [0, 0, 1, 1], [], []>} : vector<32x80xf32>, vector<80x128xf32>, vector<32x128xf32> -> vector<32x128xf32>
    %59 = arith.addf %46, %58 : vector<32x128xf32>
    %c0_66 = arith.constant 0 : index
    %c1_67 = arith.constant 1 : index
    %c1_68 = arith.constant 1 : index
    %c0_69 = arith.constant 0 : index
    %60 = vector.load %arg1[%c0_66, %c1_67, %c1_68, %c0_69] : memref<1x6x10x40xf32, #tpu.memory_space<vmem>>, vector<1x4x8x40xf32>
    %61 = vector.shape_cast %60 : vector<1x4x8x40xf32> to vector<4x8x40xf32>
    %62 = vector.shape_cast %61 : vector<4x8x40xf32> to vector<32x40xf32>
    %c1_70 = arith.constant 1 : index
    %c1_71 = arith.constant 1 : index
    %c0_72 = arith.constant 0 : index
    %63 = vector.load %arg8[%c1_70, %c1_71, %c0_72] : memref<6x10x80xf32, #tpu.memory_space<vmem>>, vector<4x8x80xf32>
    %64 = vector.shape_cast %63 : vector<4x8x80xf32> to vector<32x80xf32>
    %c4 = arith.constant 4 : index
    %c0_73 = arith.constant 0 : index
    %c0_74 = arith.constant 0 : index
    %65 = vector.load %arg3[%c4, %c0_73, %c0_74] : memref<9x40x192xf32, #tpu.memory_space<vmem>>, vector<1x40x192xf32>
    %66 = vector.shape_cast %65 : vector<1x40x192xf32> to vector<40x192xf32>
    %cst_75 = arith.constant dense<0.000000e+00> : vector<32x192xf32>
    %67 = tpu.matmul %62, %66, %cst_75 {dimension_numbers = #tpu.dot_dimension_numbers<[1], [0], [0], [1], [0, 0, 1, 1], [], []>} : vector<32x40xf32>, vector<40x192xf32>, vector<32x192xf32> -> vector<32x192xf32>
    %68 = arith.addf %55, %67 : vector<32x192xf32>
    %c4_76 = arith.constant 4 : index
    %c0_77 = arith.constant 0 : index
    %c0_78 = arith.constant 0 : index
    %69 = vector.load %arg4[%c4_76, %c0_77, %c0_78] : memref<9x80x128xf32, #tpu.memory_space<vmem>>, vector<1x80x128xf32>
    %70 = vector.shape_cast %69 : vector<1x80x128xf32> to vector<80x128xf32>
    %cst_79 = arith.constant dense<0.000000e+00> : vector<32x128xf32>
    %71 = tpu.matmul %64, %70, %cst_79 {dimension_numbers = #tpu.dot_dimension_numbers<[1], [0], [0], [1], [0, 0, 1, 1], [], []>} : vector<32x80xf32>, vector<80x128xf32>, vector<32x128xf32> -> vector<32x128xf32>
    %72 = arith.addf %59, %71 : vector<32x128xf32>
    %c0_80 = arith.constant 0 : index
    %c1_81 = arith.constant 1 : index
    %c2_82 = arith.constant 2 : index
    %c0_83 = arith.constant 0 : index
    %73 = vector.load %arg1[%c0_80, %c1_81, %c2_82, %c0_83] : memref<1x6x10x40xf32, #tpu.memory_space<vmem>>, vector<1x4x8x40xf32>
    %74 = vector.shape_cast %73 : vector<1x4x8x40xf32> to vector<4x8x40xf32>
    %75 = vector.shape_cast %74 : vector<4x8x40xf32> to vector<32x40xf32>
    %c1_84 = arith.constant 1 : index
    %c2_85 = arith.constant 2 : index
    %c0_86 = arith.constant 0 : index
    %76 = vector.load %arg8[%c1_84, %c2_85, %c0_86] : memref<6x10x80xf32, #tpu.memory_space<vmem>>, vector<4x8x80xf32>
    %77 = vector.shape_cast %76 : vector<4x8x80xf32> to vector<32x80xf32>
    %c5 = arith.constant 5 : index
    %c0_87 = arith.constant 0 : index
    %c0_88 = arith.constant 0 : index
    %78 = vector.load %arg3[%c5, %c0_87, %c0_88] : memref<9x40x192xf32, #tpu.memory_space<vmem>>, vector<1x40x192xf32>
    %79 = vector.shape_cast %78 : vector<1x40x192xf32> to vector<40x192xf32>
    %cst_89 = arith.constant dense<0.000000e+00> : vector<32x192xf32>
    %80 = tpu.matmul %75, %79, %cst_89 {dimension_numbers = #tpu.dot_dimension_numbers<[1], [0], [0], [1], [0, 0, 1, 1], [], []>} : vector<32x40xf32>, vector<40x192xf32>, vector<32x192xf32> -> vector<32x192xf32>
    %81 = arith.addf %68, %80 : vector<32x192xf32>
    %c5_90 = arith.constant 5 : index
    %c0_91 = arith.constant 0 : index
    %c0_92 = arith.constant 0 : index
    %82 = vector.load %arg4[%c5_90, %c0_91, %c0_92] : memref<9x80x128xf32, #tpu.memory_space<vmem>>, vector<1x80x128xf32>
    %83 = vector.shape_cast %82 : vector<1x80x128xf32> to vector<80x128xf32>
    %cst_93 = arith.constant dense<0.000000e+00> : vector<32x128xf32>
    %84 = tpu.matmul %77, %83, %cst_93 {dimension_numbers = #tpu.dot_dimension_numbers<[1], [0], [0], [1], [0, 0, 1, 1], [], []>} : vector<32x80xf32>, vector<80x128xf32>, vector<32x128xf32> -> vector<32x128xf32>
    %85 = arith.addf %72, %84 : vector<32x128xf32>
    %c0_94 = arith.constant 0 : index
    %c2_95 = arith.constant 2 : index
    %c0_96 = arith.constant 0 : index
    %c0_97 = arith.constant 0 : index
    %86 = vector.load %arg1[%c0_94, %c2_95, %c0_96, %c0_97] : memref<1x6x10x40xf32, #tpu.memory_space<vmem>>, vector<1x4x8x40xf32>
    %87 = vector.shape_cast %86 : vector<1x4x8x40xf32> to vector<4x8x40xf32>
    %88 = vector.shape_cast %87 : vector<4x8x40xf32> to vector<32x40xf32>
    %c2_98 = arith.constant 2 : index
    %c0_99 = arith.constant 0 : index
    %c0_100 = arith.constant 0 : index
    %89 = vector.load %arg8[%c2_98, %c0_99, %c0_100] : memref<6x10x80xf32, #tpu.memory_space<vmem>>, vector<4x8x80xf32>
    %90 = vector.shape_cast %89 : vector<4x8x80xf32> to vector<32x80xf32>
    %c6 = arith.constant 6 : index
    %c0_101 = arith.constant 0 : index
    %c0_102 = arith.constant 0 : index
    %91 = vector.load %arg3[%c6, %c0_101, %c0_102] : memref<9x40x192xf32, #tpu.memory_space<vmem>>, vector<1x40x192xf32>
    %92 = vector.shape_cast %91 : vector<1x40x192xf32> to vector<40x192xf32>
    %cst_103 = arith.constant dense<0.000000e+00> : vector<32x192xf32>
    %93 = tpu.matmul %88, %92, %cst_103 {dimension_numbers = #tpu.dot_dimension_numbers<[1], [0], [0], [1], [0, 0, 1, 1], [], []>} : vector<32x40xf32>, vector<40x192xf32>, vector<32x192xf32> -> vector<32x192xf32>
    %94 = arith.addf %81, %93 : vector<32x192xf32>
    %c6_104 = arith.constant 6 : index
    %c0_105 = arith.constant 0 : index
    %c0_106 = arith.constant 0 : index
    %95 = vector.load %arg4[%c6_104, %c0_105, %c0_106] : memref<9x80x128xf32, #tpu.memory_space<vmem>>, vector<1x80x128xf32>
    %96 = vector.shape_cast %95 : vector<1x80x128xf32> to vector<80x128xf32>
    %cst_107 = arith.constant dense<0.000000e+00> : vector<32x128xf32>
    %97 = tpu.matmul %90, %96, %cst_107 {dimension_numbers = #tpu.dot_dimension_numbers<[1], [0], [0], [1], [0, 0, 1, 1], [], []>} : vector<32x80xf32>, vector<80x128xf32>, vector<32x128xf32> -> vector<32x128xf32>
    %98 = arith.addf %85, %97 : vector<32x128xf32>
    %c0_108 = arith.constant 0 : index
    %c2_109 = arith.constant 2 : index
    %c1_110 = arith.constant 1 : index
    %c0_111 = arith.constant 0 : index
    %99 = vector.load %arg1[%c0_108, %c2_109, %c1_110, %c0_111] : memref<1x6x10x40xf32, #tpu.memory_space<vmem>>, vector<1x4x8x40xf32>
    %100 = vector.shape_cast %99 : vector<1x4x8x40xf32> to vector<4x8x40xf32>
    %101 = vector.shape_cast %100 : vector<4x8x40xf32> to vector<32x40xf32>
    %c2_112 = arith.constant 2 : index
    %c1_113 = arith.constant 1 : index
    %c0_114 = arith.constant 0 : index
    %102 = vector.load %arg8[%c2_112, %c1_113, %c0_114] : memref<6x10x80xf32, #tpu.memory_space<vmem>>, vector<4x8x80xf32>
    %103 = vector.shape_cast %102 : vector<4x8x80xf32> to vector<32x80xf32>
    %c7 = arith.constant 7 : index
    %c0_115 = arith.constant 0 : index
    %c0_116 = arith.constant 0 : index
    %104 = vector.load %arg3[%c7, %c0_115, %c0_116] : memref<9x40x192xf32, #tpu.memory_space<vmem>>, vector<1x40x192xf32>
    %105 = vector.shape_cast %104 : vector<1x40x192xf32> to vector<40x192xf32>
    %cst_117 = arith.constant dense<0.000000e+00> : vector<32x192xf32>
    %106 = tpu.matmul %101, %105, %cst_117 {dimension_numbers = #tpu.dot_dimension_numbers<[1], [0], [0], [1], [0, 0, 1, 1], [], []>} : vector<32x40xf32>, vector<40x192xf32>, vector<32x192xf32> -> vector<32x192xf32>
    %107 = arith.addf %94, %106 : vector<32x192xf32>
    %c7_118 = arith.constant 7 : index
    %c0_119 = arith.constant 0 : index
    %c0_120 = arith.constant 0 : index
    %108 = vector.load %arg4[%c7_118, %c0_119, %c0_120] : memref<9x80x128xf32, #tpu.memory_space<vmem>>, vector<1x80x128xf32>
    %109 = vector.shape_cast %108 : vector<1x80x128xf32> to vector<80x128xf32>
    %cst_121 = arith.constant dense<0.000000e+00> : vector<32x128xf32>
    %110 = tpu.matmul %103, %109, %cst_121 {dimension_numbers = #tpu.dot_dimension_numbers<[1], [0], [0], [1], [0, 0, 1, 1], [], []>} : vector<32x80xf32>, vector<80x128xf32>, vector<32x128xf32> -> vector<32x128xf32>
    %111 = arith.addf %98, %110 : vector<32x128xf32>
    %c0_122 = arith.constant 0 : index
    %c2_123 = arith.constant 2 : index
    %c2_124 = arith.constant 2 : index
    %c0_125 = arith.constant 0 : index
    %112 = vector.load %arg1[%c0_122, %c2_123, %c2_124, %c0_125] : memref<1x6x10x40xf32, #tpu.memory_space<vmem>>, vector<1x4x8x40xf32>
    %113 = vector.shape_cast %112 : vector<1x4x8x40xf32> to vector<4x8x40xf32>
    %114 = vector.shape_cast %113 : vector<4x8x40xf32> to vector<32x40xf32>
    %c2_126 = arith.constant 2 : index
    %c2_127 = arith.constant 2 : index
    %c0_128 = arith.constant 0 : index
    %115 = vector.load %arg8[%c2_126, %c2_127, %c0_128] : memref<6x10x80xf32, #tpu.memory_space<vmem>>, vector<4x8x80xf32>
    %116 = vector.shape_cast %115 : vector<4x8x80xf32> to vector<32x80xf32>
    %c8_129 = arith.constant 8 : index
    %c0_130 = arith.constant 0 : index
    %c0_131 = arith.constant 0 : index
    %117 = vector.load %arg3[%c8_129, %c0_130, %c0_131] : memref<9x40x192xf32, #tpu.memory_space<vmem>>, vector<1x40x192xf32>
    %118 = vector.shape_cast %117 : vector<1x40x192xf32> to vector<40x192xf32>
    %cst_132 = arith.constant dense<0.000000e+00> : vector<32x192xf32>
    %119 = tpu.matmul %114, %118, %cst_132 {dimension_numbers = #tpu.dot_dimension_numbers<[1], [0], [0], [1], [0, 0, 1, 1], [], []>} : vector<32x40xf32>, vector<40x192xf32>, vector<32x192xf32> -> vector<32x192xf32>
    %120 = arith.addf %107, %119 : vector<32x192xf32>
    %c8_133 = arith.constant 8 : index
    %c0_134 = arith.constant 0 : index
    %c0_135 = arith.constant 0 : index
    %121 = vector.load %arg4[%c8_133, %c0_134, %c0_135] : memref<9x80x128xf32, #tpu.memory_space<vmem>>, vector<1x80x128xf32>
    %122 = vector.shape_cast %121 : vector<1x80x128xf32> to vector<80x128xf32>
    %cst_136 = arith.constant dense<0.000000e+00> : vector<32x128xf32>
    %123 = tpu.matmul %116, %122, %cst_136 {dimension_numbers = #tpu.dot_dimension_numbers<[1], [0], [0], [1], [0, 0, 1, 1], [], []>} : vector<32x80xf32>, vector<80x128xf32>, vector<32x128xf32> -> vector<32x128xf32>
    %124 = arith.addf %111, %123 : vector<32x128xf32>
    %125 = vector.extract_strided_slice %120 {offsets = [0, 0], sizes = [32, 64], strides = [1, 1]} : vector<32x192xf32> to vector<32x64xf32>
    %126 = vector.extract_strided_slice %124 {offsets = [0, 0], sizes = [32, 64], strides = [1, 1]} : vector<32x128xf32> to vector<32x64xf32>
    %127 = arith.addf %125, %126 : vector<32x64xf32>
    %c0_137 = arith.constant 0 : index
    %c0_138 = arith.constant 0 : index
    %128 = vector.load %arg6[%c0_137, %c0_138] : memref<3x64xf32, #tpu.memory_space<vmem>>, vector<1x64xf32>
    %129 = vector.broadcast %128 : vector<1x64xf32> to vector<32x64xf32>
    %130 = arith.addf %127, %129 : vector<32x64xf32>
    %131 = vector.extract_strided_slice %120 {offsets = [0, 64], sizes = [32, 64], strides = [1, 1]} : vector<32x192xf32> to vector<32x64xf32>
    %132 = vector.extract_strided_slice %124 {offsets = [0, 64], sizes = [32, 64], strides = [1, 1]} : vector<32x128xf32> to vector<32x64xf32>
    %133 = arith.addf %131, %132 : vector<32x64xf32>
    %c1_139 = arith.constant 1 : index
    %c0_140 = arith.constant 0 : index
    %134 = vector.load %arg6[%c1_139, %c0_140] : memref<3x64xf32, #tpu.memory_space<vmem>>, vector<1x64xf32>
    %135 = vector.broadcast %134 : vector<1x64xf32> to vector<32x64xf32>
    %136 = arith.addf %133, %135 : vector<32x64xf32>
    %137 = arith.negf %130 : vector<32x64xf32>
    %138 = math.exp %137 : vector<32x64xf32>
    %cst_141 = arith.constant 1.000000e+00 : f32
    %139 = vector.broadcast %cst_141 : f32 to vector<32x64xf32>
    %140 = arith.addf %139, %138 : vector<32x64xf32>
    %141 = arith.divf %139, %140 : vector<32x64xf32>
    %142 = arith.negf %136 : vector<32x64xf32>
    %143 = math.exp %142 : vector<32x64xf32>
    %cst_142 = arith.constant 1.000000e+00 : f32
    %144 = vector.broadcast %cst_142 : f32 to vector<32x64xf32>
    %145 = arith.addf %144, %143 : vector<32x64xf32>
    %146 = arith.divf %144, %145 : vector<32x64xf32>
    %147 = arith.mulf %141, %3 : vector<32x64xf32>
    %148 = vector.shape_cast %147 : vector<32x64xf32> to vector<4x8x64xf32>
    %c1_143 = arith.constant 1 : index
    %c1_144 = arith.constant 1 : index
    %c8_145 = arith.constant 8 : index
    %149 = vector.load %arg8[%c1_143, %c1_144, %c8_145] : memref<6x10x80xf32, #tpu.memory_space<vmem>>, vector<4x8x64xf32>
    tpu.vector_store %arg8[%c1_143, %c1_144, %c8_145], %148 {strides = array<i32>} : memref<6x10x80xf32, #tpu.memory_space<vmem>>, vector<4x8x64xf32>,
    %150 = vector.extract_strided_slice %120 {offsets = [0, 128], sizes = [32, 64], strides = [1, 1]} : vector<32x192xf32> to vector<32x64xf32>
    %c0_146 = arith.constant 0 : index
    %c0_147 = arith.constant 0 : index
    %c0_148 = arith.constant 0 : index
    %151 = vector.load %arg8[%c0_146, %c0_147, %c0_148] : memref<6x10x80xf32, #tpu.memory_space<vmem>>, vector<4x8x80xf32>
    %152 = vector.shape_cast %151 : vector<4x8x80xf32> to vector<32x80xf32>
    %c0_149 = arith.constant 0 : index
    %c0_150 = arith.constant 0 : index
    %c0_151 = arith.constant 0 : index
    %153 = vector.load %arg5[%c0_149, %c0_150, %c0_151] : memref<9x80x64xf32, #tpu.memory_space<vmem>>, vector<1x80x64xf32>
    %154 = vector.shape_cast %153 : vector<1x80x64xf32> to vector<80x64xf32>
    %cst_152 = arith.constant dense<0.000000e+00> : vector<32x64xf32>
    %155 = tpu.matmul %152, %154, %cst_152 {dimension_numbers = #tpu.dot_dimension_numbers<[1], [0], [0], [1], [0, 0, 1, 1], [], []>} : vector<32x80xf32>, vector<80x64xf32>, vector<32x64xf32> -> vector<32x64xf32>
    %156 = arith.addf %150, %155 : vector<32x64xf32>
    %c0_153 = arith.constant 0 : index
    %c1_154 = arith.constant 1 : index
    %c0_155 = arith.constant 0 : index
    %157 = vector.load %arg8[%c0_153, %c1_154, %c0_155] : memref<6x10x80xf32, #tpu.memory_space<vmem>>, vector<4x8x80xf32>
    %158 = vector.shape_cast %157 : vector<4x8x80xf32> to vector<32x80xf32>
    %c1_156 = arith.constant 1 : index
    %c0_157 = arith.constant 0 : index
    %c0_158 = arith.constant 0 : index
    %159 = vector.load %arg5[%c1_156, %c0_157, %c0_158] : memref<9x80x64xf32, #tpu.memory_space<vmem>>, vector<1x80x64xf32>
    %160 = vector.shape_cast %159 : vector<1x80x64xf32> to vector<80x64xf32>
    %cst_159 = arith.constant dense<0.000000e+00> : vector<32x64xf32>
    %161 = tpu.matmul %158, %160, %cst_159 {dimension_numbers = #tpu.dot_dimension_numbers<[1], [0], [0], [1], [0, 0, 1, 1], [], []>} : vector<32x80xf32>, vector<80x64xf32>, vector<32x64xf32> -> vector<32x64xf32>
    %162 = arith.addf %156, %161 : vector<32x64xf32>
    %c0_160 = arith.constant 0 : index
    %c2_161 = arith.constant 2 : index
    %c0_162 = arith.constant 0 : index
    %163 = vector.load %arg8[%c0_160, %c2_161, %c0_162] : memref<6x10x80xf32, #tpu.memory_space<vmem>>, vector<4x8x80xf32>
    %164 = vector.shape_cast %163 : vector<4x8x80xf32> to vector<32x80xf32>
    %c2_163 = arith.constant 2 : index
    %c0_164 = arith.constant 0 : index
    %c0_165 = arith.constant 0 : index
    %165 = vector.load %arg5[%c2_163, %c0_164, %c0_165] : memref<9x80x64xf32, #tpu.memory_space<vmem>>, vector<1x80x64xf32>
    %166 = vector.shape_cast %165 : vector<1x80x64xf32> to vector<80x64xf32>
    %cst_166 = arith.constant dense<0.000000e+00> : vector<32x64xf32>
    %167 = tpu.matmul %164, %166, %cst_166 {dimension_numbers = #tpu.dot_dimension_numbers<[1], [0], [0], [1], [0, 0, 1, 1], [], []>} : vector<32x80xf32>, vector<80x64xf32>, vector<32x64xf32> -> vector<32x64xf32>
    %168 = arith.addf %162, %167 : vector<32x64xf32>
    %c1_167 = arith.constant 1 : index
    %c0_168 = arith.constant 0 : index
    %c0_169 = arith.constant 0 : index
    %169 = vector.load %arg8[%c1_167, %c0_168, %c0_169] : memref<6x10x80xf32, #tpu.memory_space<vmem>>, vector<4x8x80xf32>
    %170 = vector.shape_cast %169 : vector<4x8x80xf32> to vector<32x80xf32>
    %c3_170 = arith.constant 3 : index
    %c0_171 = arith.constant 0 : index
    %c0_172 = arith.constant 0 : index
    %171 = vector.load %arg5[%c3_170, %c0_171, %c0_172] : memref<9x80x64xf32, #tpu.memory_space<vmem>>, vector<1x80x64xf32>
    %172 = vector.shape_cast %171 : vector<1x80x64xf32> to vector<80x64xf32>
    %cst_173 = arith.constant dense<0.000000e+00> : vector<32x64xf32>
    %173 = tpu.matmul %170, %172, %cst_173 {dimension_numbers = #tpu.dot_dimension_numbers<[1], [0], [0], [1], [0, 0, 1, 1], [], []>} : vector<32x80xf32>, vector<80x64xf32>, vector<32x64xf32> -> vector<32x64xf32>
    %174 = arith.addf %168, %173 : vector<32x64xf32>
    %c1_174 = arith.constant 1 : index
    %c1_175 = arith.constant 1 : index
    %c0_176 = arith.constant 0 : index
    %175 = vector.load %arg8[%c1_174, %c1_175, %c0_176] : memref<6x10x80xf32, #tpu.memory_space<vmem>>, vector<4x8x80xf32>
    %176 = vector.shape_cast %175 : vector<4x8x80xf32> to vector<32x80xf32>
    %c4_177 = arith.constant 4 : index
    %c0_178 = arith.constant 0 : index
    %c0_179 = arith.constant 0 : index
    %177 = vector.load %arg5[%c4_177, %c0_178, %c0_179] : memref<9x80x64xf32, #tpu.memory_space<vmem>>, vector<1x80x64xf32>
    %178 = vector.shape_cast %177 : vector<1x80x64xf32> to vector<80x64xf32>
    %cst_180 = arith.constant dense<0.000000e+00> : vector<32x64xf32>
    %179 = tpu.matmul %176, %178, %cst_180 {dimension_numbers = #tpu.dot_dimension_numbers<[1], [0], [0], [1], [0, 0, 1, 1], [], []>} : vector<32x80xf32>, vector<80x64xf32>, vector<32x64xf32> -> vector<32x64xf32>
    %180 = arith.addf %174, %179 : vector<32x64xf32>
    %c1_181 = arith.constant 1 : index
    %c2_182 = arith.constant 2 : index
    %c0_183 = arith.constant 0 : index
    %181 = vector.load %arg8[%c1_181, %c2_182, %c0_183] : memref<6x10x80xf32, #tpu.memory_space<vmem>>, vector<4x8x80xf32>
    %182 = vector.shape_cast %181 : vector<4x8x80xf32> to vector<32x80xf32>
    %c5_184 = arith.constant 5 : index
    %c0_185 = arith.constant 0 : index
    %c0_186 = arith.constant 0 : index
    %183 = vector.load %arg5[%c5_184, %c0_185, %c0_186] : memref<9x80x64xf32, #tpu.memory_space<vmem>>, vector<1x80x64xf32>
    %184 = vector.shape_cast %183 : vector<1x80x64xf32> to vector<80x64xf32>
    %cst_187 = arith.constant dense<0.000000e+00> : vector<32x64xf32>
    %185 = tpu.matmul %182, %184, %cst_187 {dimension_numbers = #tpu.dot_dimension_numbers<[1], [0], [0], [1], [0, 0, 1, 1], [], []>} : vector<32x80xf32>, vector<80x64xf32>, vector<32x64xf32> -> vector<32x64xf32>
    %186 = arith.addf %180, %185 : vector<32x64xf32>
    %c2_188 = arith.constant 2 : index
    %c0_189 = arith.constant 0 : index
    %c0_190 = arith.constant 0 : index
    %187 = vector.load %arg8[%c2_188, %c0_189, %c0_190] : memref<6x10x80xf32, #tpu.memory_space<vmem>>, vector<4x8x80xf32>
    %188 = vector.shape_cast %187 : vector<4x8x80xf32> to vector<32x80xf32>
    %c6_191 = arith.constant 6 : index
    %c0_192 = arith.constant 0 : index
    %c0_193 = arith.constant 0 : index
    %189 = vector.load %arg5[%c6_191, %c0_192, %c0_193] : memref<9x80x64xf32, #tpu.memory_space<vmem>>, vector<1x80x64xf32>
    %190 = vector.shape_cast %189 : vector<1x80x64xf32> to vector<80x64xf32>
    %cst_194 = arith.constant dense<0.000000e+00> : vector<32x64xf32>
    %191 = tpu.matmul %188, %190, %cst_194 {dimension_numbers = #tpu.dot_dimension_numbers<[1], [0], [0], [1], [0, 0, 1, 1], [], []>} : vector<32x80xf32>, vector<80x64xf32>, vector<32x64xf32> -> vector<32x64xf32>
    %192 = arith.addf %186, %191 : vector<32x64xf32>
    %c2_195 = arith.constant 2 : index
    %c1_196 = arith.constant 1 : index
    %c0_197 = arith.constant 0 : index
    %193 = vector.load %arg8[%c2_195, %c1_196, %c0_197] : memref<6x10x80xf32, #tpu.memory_space<vmem>>, vector<4x8x80xf32>
    %194 = vector.shape_cast %193 : vector<4x8x80xf32> to vector<32x80xf32>
    %c7_198 = arith.constant 7 : index
    %c0_199 = arith.constant 0 : index
    %c0_200 = arith.constant 0 : index
    %195 = vector.load %arg5[%c7_198, %c0_199, %c0_200] : memref<9x80x64xf32, #tpu.memory_space<vmem>>, vector<1x80x64xf32>
    %196 = vector.shape_cast %195 : vector<1x80x64xf32> to vector<80x64xf32>
    %cst_201 = arith.constant dense<0.000000e+00> : vector<32x64xf32>
    %197 = tpu.matmul %194, %196, %cst_201 {dimension_numbers = #tpu.dot_dimension_numbers<[1], [0], [0], [1], [0, 0, 1, 1], [], []>} : vector<32x80xf32>, vector<80x64xf32>, vector<32x64xf32> -> vector<32x64xf32>
    %198 = arith.addf %192, %197 : vector<32x64xf32>
    %c2_202 = arith.constant 2 : index
    %c2_203 = arith.constant 2 : index
    %c0_204 = arith.constant 0 : index
    %199 = vector.load %arg8[%c2_202, %c2_203, %c0_204] : memref<6x10x80xf32, #tpu.memory_space<vmem>>, vector<4x8x80xf32>
    %200 = vector.shape_cast %199 : vector<4x8x80xf32> to vector<32x80xf32>
    %c8_205 = arith.constant 8 : index
    %c0_206 = arith.constant 0 : index
    %c0_207 = arith.constant 0 : index
    %201 = vector.load %arg5[%c8_205, %c0_206, %c0_207] : memref<9x80x64xf32, #tpu.memory_space<vmem>>, vector<1x80x64xf32>
    %202 = vector.shape_cast %201 : vector<1x80x64xf32> to vector<80x64xf32>
    %cst_208 = arith.constant dense<0.000000e+00> : vector<32x64xf32>
    %203 = tpu.matmul %200, %202, %cst_208 {dimension_numbers = #tpu.dot_dimension_numbers<[1], [0], [0], [1], [0, 0, 1, 1], [], []>} : vector<32x80xf32>, vector<80x64xf32>, vector<32x64xf32> -> vector<32x64xf32>
    %204 = arith.addf %198, %203 : vector<32x64xf32>
    %c2_209 = arith.constant 2 : index
    %c0_210 = arith.constant 0 : index
    %205 = vector.load %arg6[%c2_209, %c0_210] : memref<3x64xf32, #tpu.memory_space<vmem>>, vector<1x64xf32>
    %206 = vector.broadcast %205 : vector<1x64xf32> to vector<32x64xf32>
    %207 = arith.addf %204, %206 : vector<32x64xf32>
    %208 = math.tanh %207 : vector<32x64xf32>
    %209 = arith.subf %208, %3 : vector<32x64xf32>
    %210 = arith.mulf %146, %209 : vector<32x64xf32>
    %211 = arith.addf %3, %210 : vector<32x64xf32>
    %c0_211 = arith.constant 0 : index
    %c0_212 = arith.constant 0 : index
    %c0_213 = arith.constant 0 : index
    %212 = vector.load %arg7[%c0_211, %c0_212, %c0_213] : memref<1x32x64xf32, #tpu.memory_space<vmem>>, vector<1x32x64xf32>
    %213 = vector.shape_cast %212 : vector<1x32x64xf32> to vector<32x64xf32>
    %214 = vector.shape_cast %211 : vector<32x64xf32> to vector<1x32x64xf32>
    tpu.vector_store %arg7[%c0_211, %c0_212, %c0_213], %214 {strides = array<i32>} : memref<1x32x64xf32, #tpu.memory_space<vmem>>, vector<1x32x64xf32>,
    return
  }
  func.func @transform_0(%arg0: i32) -> (i32, i32, i32, i32) {
    %c0_i32 = arith.constant 0 : i32
    %c0_i32_0 = arith.constant 0 : i32
    %c0_i32_1 = arith.constant 0 : i32
    %c0_i32_2 = arith.constant 0 : i32
    return %arg0, %c0_i32, %c0_i32_0, %c0_i32_1 : i32, i32, i32, i32
  }
  func.func @transform_1(%arg0: i32) -> (i32, i32, i32) {
    %c0_i32 = arith.constant 0 : i32
    %c0_i32_0 = arith.constant 0 : i32
    %c0_i32_1 = arith.constant 0 : i32
    return %arg0, %c0_i32, %c0_i32_0 : i32, i32, i32
  }
  func.func @transform_2(%arg0: i32) -> (i32, i32, i32) {
    %c0_i32 = arith.constant 0 : i32
    %c0_i32_0 = arith.constant 0 : i32
    %c0_i32_1 = arith.constant 0 : i32
    %c0_i32_2 = arith.constant 0 : i32
    return %c0_i32, %c0_i32_0, %c0_i32_1 : i32, i32, i32
  }
  func.func @transform_3(%arg0: i32) -> (i32, i32, i32) {
    %c0_i32 = arith.constant 0 : i32
    %c0_i32_0 = arith.constant 0 : i32
    %c0_i32_1 = arith.constant 0 : i32
    %c0_i32_2 = arith.constant 0 : i32
    return %c0_i32, %c0_i32_0, %c0_i32_1 : i32, i32, i32
  }
  func.func @transform_4(%arg0: i32) -> (i32, i32, i32) {
    %c0_i32 = arith.constant 0 : i32
    %c0_i32_0 = arith.constant 0 : i32
    %c0_i32_1 = arith.constant 0 : i32
    %c0_i32_2 = arith.constant 0 : i32
    return %c0_i32, %c0_i32_0, %c0_i32_1 : i32, i32, i32
  }
  func.func @transform_5(%arg0: i32) -> (i32, i32) {
    %c0_i32 = arith.constant 0 : i32
    %c0_i32_0 = arith.constant 0 : i32
    %c0_i32_1 = arith.constant 0 : i32
    return %c0_i32, %c0_i32_0 : i32, i32
  }
  func.func @transform_6(%arg0: i32) -> (i32, i32, i32) {
    %c0_i32 = arith.constant 0 : i32
    %c0_i32_0 = arith.constant 0 : i32
    %c0_i32_1 = arith.constant 0 : i32
    return %arg0, %c0_i32, %c0_i32_0 : i32, i32, i32
  }
}

</mosaic_0001>

<bundles_post_ra>
// kernel: tile.18
= control target key start
LH: loop header
LB: loop body
LE: loop exit
PB: predicated region body
PF: predicated region fallthrough
CT: control target
= control target key end

     0   :  { %s22_s0 = inlined_call_operand.vmem [shape: f32[8], index: 0, kind: input, shape index: {}]   ;;  %s23_s1 = inlined_call_operand.vmem [shape: f32[8,8], index: 1, kind: output, shape index: {}]  }
   0x1   :  { %v4_v0 = vld [vmem:[%s22_s0] ss:$0 sm:$0xff] }
   0x2   :  { %5 = vst [vmem:[%s23_s1] sm:$0xff] %v4_v0 }

// kernel: tile.27
= control target key start
LH: loop header
LB: loop body
LE: loop exit
PB: predicated region body
PF: predicated region fallthrough
CT: control target
= control target key end

     0   :  { %s67_s10 = smov 56   ;;  %s68_s11 = smov 40   ;;  %vm3_vm0 = vcmask 64512   ;;  %vm9_vm1 = vcmask 523712   ;;  %vm15_vm2 = vcmask 458112   ;;  %vm21_vm3 = vcmask 392512   ;;  %s111_s0 = inlined_call_operand.vmem [shape: f32[8,8], index: 0, kind: input, shape index: {}]   ;;  %s112_s1 = inlined_call_operand.vmem [shape: f32[1,64], index: 1, kind: output, shape index: {}]  }
   0x1   :  { %v53_v0 = vld [vmem:[%s111_s0 + $0x7] sm:$0x1]   ;;  %v55_v1 = vld [vmem:[%s111_s0 + $0x5] sm:$0x1]   ;;  %v54_v2 = vld [vmem:[%s111_s0 + $0x6] sm:$0x1]  }
   0x2   :  { %7 = vrot.lane.b32.xlu0 %v53_v0, %s67_s10  ;;  %19 = vrot.lane.b32.xlu1 %v55_v1, %s68_s11  ;;  %v56_v3 = vld [vmem:[%s111_s0 + $0x4] sm:$0x1]   ;;  %v2_v4 = vld [vmem:[%s111_s0] sm:$0x1]   ;;  %s69_s18 = smov 48   ;;  %s70_s19 = smov 32  }
   0x3   :  { %4 = vst.msk [vmem:[#allocation0] sm:$0x1] %vm3_vm0, %v2_v4   ;;  %v57_v5 = vld [vmem:[%s111_s0 + $0x3] sm:$0x1]   ;;  %v58_v6 = vld [vmem:[%s111_s0 + $0x2] sm:$0x1]  }
   0x4   :  { %s71_s24 = smov 24   ;;  %s72_s25 = smov 16   ;;  %v59_v7 = vld [vmem:[%s111_s0 + $0x1] sm:$0x1]   ;;  %vm27_vm4 = vcmask 326912   ;;  %vm33_vm5 = vcmask 261312  }
   0x5   :  { %s73_s0 = smov 8   ;;  %vm39_vm6 = vcmask 195712   ;;  %vm45_vm7 = vcmask 130112  }
   0x6   :  { %13 = vrot.lane.b32.xlu0 %v54_v2, %s69_s18  ;;  %25 = vrot.lane.b32.xlu1 %v56_v3, %s70_s19 }
   0xa   :  { %31 = vrot.lane.b32.xlu0 %v57_v5, %s71_s24  ;;  %37 = vrot.lane.b32.xlu1 %v58_v6, %s72_s25 }
   0xe   :  { %43 = vrot.lane.b32.xlu0 %v59_v7, %s73_s0 }
  0x74   :  { %v8_v8 = vpop.permute.xlu0 %7   ;;  %v20_v9 = vpop.permute.xlu1 %19  }
  0x75   :  { %10 = vst.msk [vmem:[#allocation0] sm:$0x1] %vm9_vm1, %v8_v8  }
  0x78   :  { %v14_v10 = vpop.permute.xlu0 %13   ;;  %v26_v11 = vpop.permute.xlu1 %25  }
  0x79   :  { %16 = vst.msk [vmem:[#allocation0] sm:$0x1] %vm15_vm2, %v14_v10  }
  0x7a   :  { %22 = vst.msk [vmem:[#allocation0] sm:$0x1] %vm21_vm3, %v20_v9  }
  0x7b   :  { %28 = vst.msk [vmem:[#allocation0] sm:$0x1] %vm27_vm4, %v26_v11  }
  0x7c   :  { %v32_v12 = vpop.permute.xlu0 %31   ;;  %v38_v13 = vpop.permute.xlu1 %37  }
  0x7d   :  { %34 = vst.msk [vmem:[#allocation0] sm:$0x1] %vm33_vm5, %v32_v12  }
  0x7e   :  { %40 = vst.msk [vmem:[#allocation0] sm:$0x1] %vm39_vm6, %v38_v13  }
  0x80   :  { %v44_v14 = vpop.permute.xlu0 %43  }
  0x81   :  { %46 = vst.msk [vmem:[#allocation0] sm:$0x1] %vm45_vm7, %v44_v14  }
  0x88   :  { %v50_v15 = vld [vmem:[#allocation0] sm:$0x1] }
  0x89   :  { %52 = vst [vmem:[%s112_s1] sm:$0x1] %v50_v15 }

// kernel: conv_gru_cell_forward.1
= control target key start
LH: loop header
LB: loop body
LE: loop exit
PB: predicated region body
PF: predicated region fallthrough
CT: control target
= control target key end

     0   :  { %s5468_s21 = smov 0   ;;  %s6752_s0 = inlined_call_operand.vmem [shape: f32[2,6,10,40], index: 0, kind: input, shape index: {}]   ;;  %s6753_s1 = inlined_call_operand.vmem [shape: f32[2,32,64], index: 1, kind: input, shape index: {}]   ;;  %s6754_s2 = inlined_call_operand.vmem [shape: f32[9,40,192], index: 2, kind: input, shape index: {}]   ;;  %s6755_s3 = inlined_call_operand.vmem [shape: f32[9,80,128], index: 3, kind: input, shape index: {}]   ;;  %s6756_s4 = inlined_call_operand.vmem [shape: f32[9,80,64], index: 4, kind: input, shape index: {}]   ;;  %s6757_s5 = inlined_call_operand.vmem [shape: f32[3,64], index: 5, kind: input, shape index: {}]   ;;  %s6758_s6 = inlined_call_operand.vmem [shape: f32[2,32,64], index: 6, kind: output, shape index: {}]  }
   0x1 LB: > { %s3720_s22 = sadd.s32 4294967295, %s5428_s21   ;;  %p3724_p0 = scmp.ge.s32.totalorder %s5428_s21, 1  ;;  %s5428_s21 = sphi %s5468_s21, %s16_s21  }
   0x2   : > { %p222_p1 = scmp.lt.s32.totalorder %s5428_s21, 3 }
   0x4   : > { %p223_p2 = pnand %p3724_p0, %p222_p1 }
   0x5   : > { %v321_v0 = vld [vmem:[%s6754_s2 + $0x8] sm:$0xff] (!%p223_p2)  ;;  %v323_v1 = vld [vmem:[%s6754_s2 + $0x18] sm:$0xff] (!%p223_p2)  ;;  %v320_v2 = vld [vmem:[%s6754_s2] sm:$0xff] (!%p223_p2)  ;;  %p257_p3 = scmp.lt.s32.totalorder (!%p223_p2), %s3720_s22, 1  ;;  %v5430_v7 = vmov (!%p223_p2), 0.0   ;;  %vm272_vm0 = vcmask (!%p223_p2), 654336  }
   0x6   : > { %226 = sbr.rel (%p223_p2) target bundleno = 1237 (0x4d5), region = 44  ;;  %v4845_v3 = vpack.c.bf16 (!%p223_p2), %v323_v1, %v321_v0  ;;  %v322_v4 = vld [vmem:[%s6754_s2 + $0x10] sm:$0xff] (!%p223_p2)  ;;  %v325_v5 = vld [vmem:[%s6754_s2 + $0x28] sm:$0xff] (!%p223_p2)  ;;  %v327_v6 = vld [vmem:[%s6754_s2 + $0x38] sm:$0xff] (!%p223_p2)  ;;  %537 = vmatprep.mubr.f32.mxu0 (!%p223_p2), %v5430_v7  ;;  %436 = vmatprep.mubr.f32.mxu1 (!%p223_p2), %v5430_v7  ;;  %vm274_vm1 = vcmask (!%p223_p2), 648192   ;;  %276 = vst.msk [vmem:[#allocation2 + $0x10] sm:$0xff] (!%p223_p2), %vm272_vm0, %v5430_v7 }
   0x7   : > { %v4847_v8 = vpack.c.bf16 (!%p223_p2), %v322_v4, %v320_v2  ;;  %v4849_v9 = vpack.c.bf16 (!%p223_p2), %v327_v6, %v325_v5  ;;  %v324_v10 = vld [vmem:[%s6754_s2 + $0x20] sm:$0xff] (!%p223_p2)  ;;  %v326_v11 = vld [vmem:[%s6754_s2 + $0x30] sm:$0xff] (!%p223_p2)  ;;  %275 = vst.msk [vmem:[#allocation2 + $0x8] sm:$0x3] (!%p223_p2), %vm274_vm1, %v5430_v7  ;;  %277 = vst.msk [vmem:[#allocation2 + $0x18] sm:$0x3] (!%p223_p2), %vm274_vm1, %v5430_v7 }
   0x8   : > { %285 = vst.msk [vmem:[#allocation2 + $0x58] sm:$0x3] (!%p223_p2), %vm274_vm1, %v5430_v7  ;;  %279 = vst.msk [vmem:[#allocation2 + $0x28] sm:$0x3] (!%p223_p2), %vm274_vm1, %v5430_v7  ;;  %4846 = vmatprep.subr.bf16.mxu0 (!%p223_p2), %v4845_v3  ;;  %v4851_v12 = vpack.c.bf16 (!%p223_p2), %v326_v11, %v324_v10  ;;  %v329_v13 = vld [vmem:[%s6754_s2 + $0x48] sm:$0xff] (!%p223_p2)  ;;  %v3769_v16 = vld [vmem:[%s6754_s2 + $0xb8] sm:$0xff] (!%p223_p2) }
   0x9   : > { %273 = vst.msk [vmem:[#allocation2] sm:$0xff] (!%p223_p2), %vm272_vm0, %v5430_v7  ;;  %278 = vst.msk [vmem:[#allocation2 + $0x20] sm:$0xff] (!%p223_p2), %vm272_vm0, %v5430_v7  ;;  %4848 = vmatpush1.bf16.msra.mxu0 (!%p223_p2), %v4847_v8  ;;  %v3767_v14 = vld [vmem:[%s6754_s2 + $0xa8] sm:$0xff] (!%p223_p2)  ;;  %s5431_s28 = smov (!%p223_p2), 8   ;;  %v3766_v18 = vld [vmem:[%s6754_s2 + $0xa0] sm:$0xff] (!%p223_p2)  ;;  %vm359_vm2 = vcmask (!%p223_p2), 326656  }
   0xa   : > { %280 = vst.msk [vmem:[#allocation2 + $0x30] sm:$0xff] (!%p223_p2), %vm272_vm0, %v5430_v7  ;;  %282 = vst.msk [vmem:[#allocation2 + $0x40] sm:$0xff] (!%p223_p2), %vm272_vm0, %v5430_v7  ;;  %4850 = vmatprep.subr.bf16.mxu0 (!%p223_p2), %v4849_v9  ;;  %v3768_v19 = vld [vmem:[%s6754_s2 + $0xb0] sm:$0xff] (!%p223_p2)  ;;  %v3771_v21 = vld [vmem:[%s6754_s2 + $0xc8] sm:$0xff] (!%p223_p2)  ;;  %v4893_v24 = vpack.c.bf16 (!%p223_p2), %v3769_v16, %v3767_v14  ;;  %vm307_vm3 = vcmask (!%p223_p2), 588864   ;;  %s5432_s9 = smov (!%p223_p2), 64  }
   0xb   : > { %281 = vst.msk [vmem:[#allocation2 + $0x38] sm:$0x3] (!%p223_p2), %vm274_vm1, %v5430_v7  ;;  %283 = vst.msk [vmem:[#allocation2 + $0x48] sm:$0x3] (!%p223_p2), %vm274_vm1, %v5430_v7  ;;  %v3773_v22 = vld [vmem:[%s6754_s2 + $0xd8] sm:$0xff] (!%p223_p2)  ;;  %v328_v23 = vld [vmem:[%s6754_s2 + $0x40] sm:$0xff] (!%p223_p2)  ;;  %v4895_v26 = vpack.c.bf16 (!%p223_p2), %v3768_v19, %v3766_v18 }
   0xc   : > { %284 = vst.msk [vmem:[#allocation2 + $0x50] sm:$0xff] (!%p223_p2), %vm272_vm0, %v5430_v7  ;;  %v4897_v27 = vpack.c.bf16 (!%p223_p2), %v3773_v22, %v3771_v21  ;;  %v3770_v28 = vld [vmem:[%s6754_s2 + $0xc0] sm:$0xff] (!%p223_p2)  ;;  %v3772_v29 = vld [vmem:[%s6754_s2 + $0xd0] sm:$0xff] (!%p223_p2)  ;;  %v3775_v32 = vld [vmem:[%s6754_s2 + $0xe8] sm:$0xff] (!%p223_p2)  ;;  %vm3648_vm4 = vcmask (!%p223_p2), 523264  }
   0xd   : > { %s6760_s22 = smov (!%p257_p3, %s3720_s22), 1  ;;  %4852 = vmatpush1.bf16.msra.mxu0 %v4851_v12  ;;  %v4899_v31 = vpack.c.bf16 %v3772_v29, %v3770_v28  ;;  %v3799_v33 = vld [vmem:[%s6754_s2 + $0xf8] sm:$0xff]  ;;  %v3801_v34 = vld [vmem:[%s6754_s2 + $0x108] sm:$0xff]  ;;  %v3774_v36 = vld [vmem:[%s6754_s2 + $0xe0] sm:$0xff] }
   0xe   : > { %s4115_s15 = sshll.u32 %s6760_s22, 5  ;;  %s5365_s16 = smul.u32 96, %s6760_s22  ;;  %481 = vmatprep.subr.mxu0 %v329_v13  ;;  %v4921_v37 = vpack.c.bf16 %v3801_v34, %v3799_v33  ;;  %v3798_v40 = vld [vmem:[%s6754_s2 + $0xf0] sm:$0xff]  ;;  %v3800_v41 = vld [vmem:[%s6754_s2 + $0x100] sm:$0xff]  ;;  %v3803_v42 = vld [vmem:[%s6754_s2 + $0x118] sm:$0xff] }
   0xf   : > { %s5535_s19 = scalar_lea.vmem %s6753_s1, %s4115_s15  ;;  %v3805_v43 = vld [vmem:[%s6754_s2 + $0x128] sm:$0xff]  ;;  %v4923_v45 = vpack.c.bf16 %v3800_v41, %v3798_v40  ;;  %v3802_v46 = vld [vmem:[%s6754_s2 + $0x110] sm:$0xff]  ;;  %v3731_v47 = vld [vmem:[%s6754_s2 + $0x58] sm:$0xff] }
  0x10   : > { %v286_v15 = vld [vmem:[%s5535_s19] sm:$0xff]  ;;  %v288_v17 = vld [vmem:[%s5535_s19 + $0x10] sm:$0xff]  ;;  %s5552_s7 = scalar_lea.vmem %s6752_s0, %s5365_s16  ;;  %v287_v20 = vld [vmem:[%s5535_s19 + $0x8] sm:$0xff]  ;;  %v4925_v49 = vpack.c.bf16 %v3805_v43, %v3803_v42 }
  0x11   : > { %294 = vrot.lane.b32.xlu0 %v286_v15, %s5431_s28  ;;  %298 = vrot.lane.b32.xlu1 %v288_v17, %s5431_s28  ;;  %v312_v25 = vld [vmem:[%s5552_s7] sm:$0xff]  ;;  %v5582_v30 = vld [vmem:[%s5552_s7 + $0x10] sm:$0xff] }
  0x12   : > { %482 = vmatpush1.msra.mxu0 %v328_v23  ;;  %v5597_v35 = vld [vmem:[%s5552_s7 + $0x20] sm:$0xff]  ;;  %v289_v38 = vld [vmem:[%s5535_s19 + $0x18] sm:$0xff]  ;;  %v5608_v39 = vld [vmem:[%s5552_s7 + $0x30] sm:$0xff] }
  0x13   : > { %3744 = vmatmul.mubr.msk.f32.vlgmr.msra.gmra.mrb[0].mxu0 %vm359_vm2, %v312_v25  ;;  %4894 = vmatprep.subr.bf16.mxu0 %v4893_v24  ;;  %v767_v44 = vld [vmem:[%s5552_s7 + $0x2] sm:$0xff]  ;;  %v3730_v52 = vld [vmem:[%s6754_s2 + $0x50] sm:$0xff]  ;;  %v3735_v55 = vld [vmem:[%s6754_s2 + $0x78] sm:$0xff] }
  0x14   : > { %543 = vmatprep.mubr.f32.mxu0 %v5430_v7  ;;  %4896 = vmatpush1.bf16.msra.mxu0 %v4895_v26  ;;  %v3733_v48 = vld [vmem:[%s6754_s2 + $0x68] sm:$0xff]  ;;  %v3804_v50 = vld [vmem:[%s6754_s2 + $0x120] sm:$0xff]  ;;  %v5653_v57 = vld [vmem:[%s5552_s7 + $0x12] sm:$0xff] }
  0x15   : > { %296 = vrot.lane.b32.xlu0 %v287_v20, %s5431_s28  ;;  %4898 = vmatprep.subr.bf16.mxu0 %v4897_v27  ;;  %v4837_v51 = vpack.c.bf16 %v3733_v48, %v3731_v47  ;;  %v3732_v53 = vld [vmem:[%s6754_s2 + $0x60] sm:$0xff]  ;;  %v3737_v56 = vld [vmem:[%s6754_s2 + $0x88] sm:$0xff]  ;;  %v4927_v58 = vpack.c.bf16 %v3804_v50, %v3802_v46  ;;  %v3734_v60 = vld [vmem:[%s6754_s2 + $0x70] sm:$0xff] }
  0x16   : > { %300 = vrot.lane.b32.xlu1 %v289_v38, %s5431_s28  ;;  %v4839_v54 = vpack.c.bf16 %v3732_v53, %v3730_v52  ;;  %v4841_v59 = vpack.c.bf16 %v3737_v56, %v3735_v55  ;;  %v3736_v61 = vld [vmem:[%s6754_s2 + $0x80] sm:$0xff]  ;;  %v3807_v63 = vld [vmem:[%s6754_s2 + $0x138] sm:$0xff]  ;;  %v3831_v0 = vld [vmem:[%s6754_s2 + $0x148] sm:$0xff] }
  0x17   : > { %3745 = vmatmul.mubr.msk.f32.gmra.mrb[2].mxu0 %vm359_vm2, %v5582_v30  ;;  %4838 = vmatprep.subr.bf16.mxu1 %v4837_v51  ;;  %v4843_v62 = vpack.c.bf16 %v3736_v61, %v3734_v60  ;;  %v3833_v1 = vld [vmem:[%s6754_s2 + $0x158] sm:$0xff]  ;;  %v3748_v3 = vld [vmem:[%s6755_s3 + $0x50] sm:$0xff]  ;;  %v5683_v5 = vld [vmem:[%s5552_s7 + $0x22] sm:$0xff] }
  0x18   : > { %549 = vmatprep.mubr.f32.mxu0 %v5430_v7  ;;  %4900 = vmatpush1.bf16.msra.mxu0 %v4899_v31  ;;  %v3739_v2 = vld [vmem:[%s6754_s2 + $0x98] sm:$0xff]  ;;  %v3806_v6 = vld [vmem:[%s6754_s2 + $0x130] sm:$0xff]  ;;  %v4949_v8 = vpack.c.bf16 %v3833_v1, %v3831_v0  ;;  %v3750_v9 = vld [vmem:[%s6755_s3 + $0x60] sm:$0xff] }
  0x19   : > { %806 = vmatprep.subr.mxu0 %v3775_v32  ;;  %4840 = vmatpush1.bf16.msra.mxu1 %v4839_v54  ;;  %v3749_v4 = vld [vmem:[%s6755_s3 + $0x58] sm:$0xff]  ;;  %v3751_v10 = vld [vmem:[%s6755_s3 + $0x68] sm:$0xff]  ;;  %v3738_v11 = vld [vmem:[%s6754_s2 + $0x90] sm:$0xff] }
  0x1a   : > { %4842 = vmatprep.subr.bf16.mxu1 %v4841_v59  ;;  %v4853_v12 = vpack.c.bf16 %v3749_v4, %v3748_v3  ;;  %v340_v13 = vld [vmem:[%s5552_s7 + $0x1] sm:$0xff]  ;;  %v5702_v14 = vld [vmem:[%s5552_s7 + $0x32] sm:$0xff]  ;;  %v4857_v15 = vpack.c.bf16 %v3751_v10, %v3750_v9 }
  0x1b   : > { %3746 = vmatmul.mubr.msk.f32.gmra.mrb[4].mxu0 %vm359_vm2, %v5597_v35  ;;  %v3830_v16 = vld [vmem:[%s6754_s2 + $0x140] sm:$0xff]  ;;  %v3832_v17 = vld [vmem:[%s6754_s2 + $0x150] sm:$0xff]  ;;  %v3835_v18 = vld [vmem:[%s6754_s2 + $0x168] sm:$0xff] }
  0x1c   : > { %555 = vmatprep.mubr.f32.mxu0 %v5430_v7  ;;  %807 = vmatpush1.msra.mxu0 %v3774_v36  ;;  %v3837_v19 = vld [vmem:[%s6754_s2 + $0x178] sm:$0xff]  ;;  %v3752_v20 = vld [vmem:[%s6755_s3 + $0x70] sm:$0xff]  ;;  %v4951_v22 = vpack.c.bf16 %v3832_v17, %v3830_v16  ;;  %v3834_v24 = vld [vmem:[%s6754_s2 + $0x160] sm:$0xff] }
  0x1d   : > { %4922 = vmatprep.subr.bf16.mxu0 %v4921_v37  ;;  %4844 = vmatpush1.bf16.msra.mxu1 %v4843_v62  ;;  %v3753_v21 = vld [vmem:[%s6755_s3 + $0x78] sm:$0xff]  ;;  %v4953_v23 = vpack.c.bf16 %v3837_v19, %v3835_v18  ;;  %v3836_v25 = vld [vmem:[%s6754_s2 + $0x170] sm:$0xff]  ;;  %v3754_v28 = vld [vmem:[%s6755_s3 + $0x80] sm:$0xff] }
  0x1e   : > { %380 = vmatprep.subr.mxu1 %v3739_v2  ;;  %v3826_v26 = vld [vmem:[%s5552_s7 + $0x11] sm:$0xff]  ;;  %v4861_v27 = vpack.c.bf16 %v3753_v21, %v3752_v20  ;;  %v3755_v29 = vld [vmem:[%s6755_s3 + $0x88] sm:$0xff]  ;;  %v4955_v31 = vpack.c.bf16 %v3836_v25, %v3834_v24  ;;  %v3838_v40 = vld [vmem:[%s6754_s2 + $0x180] sm:$0xff] }
  0x1f   : > { %3747 = vmatmul.mubr.msk.f32.gmra.mrb[6].mxu0 %vm359_vm2, %v5608_v39  ;;  %v3863_v32 = vld [vmem:[%s6754_s2 + $0x198] sm:$0xff]  ;;  %v3865_v33 = vld [vmem:[%s6754_s2 + $0x1a8] sm:$0xff]  ;;  %v4865_v34 = vpack.c.bf16 %v3755_v29, %v3754_v28  ;;  %v3756_v36 = vld [vmem:[%s6755_s3 + $0x90] sm:$0xff] }
  0x20   : > { %862 = vmatprep.mubr.f32.mxu0 %v5430_v7  ;;  %v3757_v37 = vld [vmem:[%s6755_s3 + $0x98] sm:$0xff]  ;;  %v5764_v38 = vld [vmem:[%s5552_s7 + $0x21] sm:$0xff]  ;;  %v4977_v41 = vpack.c.bf16 %v3865_v33, %v3863_v32  ;;  %v3866_v55 = vld [vmem:[%s6754_s2 + $0x1b0] sm:$0xff] }
  0x21   : > { %381 = vmatpush1.msra.mxu1 %v3738_v11  ;;  %v330_v42 = vld [vmem:[%s6755_s3] sm:$0xff]  ;;  %v331_v43 = vld [vmem:[%s6755_s3 + $0x8] sm:$0xff]  ;;  %v5785_v47 = vld [vmem:[%s5552_s7 + $0x31] sm:$0xff] }
  0x22   : > { %3740 = vmatmul.mubr.msk.f32.vlgmr.msra.gmra.mrb[0].mxu1 %vm359_vm2, %v340_v13  ;;  %4854 = vmatprep.subr.bf16.mxu1 %v4853_v12  ;;  %v5782_v46 = vld [vmem:[%s5552_s7 + $0x40] sm:$0xff]  ;;  %v5787_v48 = vpack.c.bf16 %v331_v43, %v330_v42  ;;  %v3867_v51 = vld [vmem:[%s6754_s2 + $0x1b8] sm:$0xff]  ;;  %v3869_v52 = vld [vmem:[%s6754_s2 + $0x1c8] sm:$0xff] }
  0x23   : > { %3776 = vmatmul.mubr.msk.f32.vlgmr.msra.gmra.mrb[0].mxu0 %vm359_vm2, %v767_v44  ;;  %4856 = vmatpush3.bf16.msra.mxu1 %v4853_v12  ;;  %v4869_v44 = vpack.c.bf16 %v3757_v37, %v3756_v36  ;;  %v3864_v50 = vld [vmem:[%s6754_s2 + $0x1a0] sm:$0xff]  ;;  %v4981_v54 = vpack.c.bf16 %v3869_v52, %v3867_v51  ;;  %v3871_v59 = vld [vmem:[%s6754_s2 + $0x1d8] sm:$0xff]  ;;  %v3895_v60 = vld [vmem:[%s6754_s2 + $0x1e8] sm:$0xff] }
  0x24   : > { %868 = vmatprep.mubr.f32.mxu0 %v5430_v7  ;;  %4924 = vmatpush1.bf16.msra.mxu0 %v4923_v45  ;;  %v344_v45 = vld [vmem:[#allocation2 + $0x1] sm:$0xff]  ;;  %v3897_v61 = vld [vmem:[%s6754_s2 + $0x1f8] sm:$0xff]  ;;  %v3870_v62 = vld [vmem:[%s6754_s2 + $0x1d0] sm:$0xff] }
  0x25   : > { %4926 = vmatprep.subr.bf16.mxu0 %v4925_v49  ;;  %4858 = vmatprep.subr.bf16.mxu1 %v4857_v15  ;;  %v3862_v49 = vld [vmem:[%s6754_s2 + $0x190] sm:$0xff]  ;;  %v3868_v56 = vld [vmem:[%s6754_s2 + $0x1c0] sm:$0xff]  ;;  %v3899_v3 = vld [vmem:[%s6754_s2 + $0x208] sm:$0xff] }
  0x26   : > { %442 = vmatprep.mubr.f32.mxu1 %v5430_v7  ;;  %v4979_v53 = vpack.c.bf16 %v3864_v50, %v3862_v49  ;;  %v5835_v0 = vld [vmem:[%s5552_s7 + $0x41] sm:$0xff]  ;;  %v3896_v2 = vld [vmem:[%s6754_s2 + $0x1f0] sm:$0xff]  ;;  %v3901_v4 = vld [vmem:[%s6754_s2 + $0x218] sm:$0xff] }
  0x27   : > { %3777 = vmatmul.mubr.msk.f32.gmra.mrb[2].mxu0 %vm359_vm2, %v5653_v57  ;;  %3741 = vmatmul.mubr.msk.f32.gmra.mrb[2].mxu1 %vm359_vm2, %v3826_v26  ;;  %v3894_v1 = vld [vmem:[%s6754_s2 + $0x1e0] sm:$0xff]  ;;  %v3900_v10 = vld [vmem:[%s6754_s2 + $0x210] sm:$0xff]  ;;  %v3903_v12 = vld [vmem:[%s6754_s2 + $0x228] sm:$0xff] }
  0x28   : > { %874 = vmatprep.mubr.f32.mxu0 %v5430_v7  ;;  %4928 = vmatpush1.bf16.msra.mxu0 %v4927_v58  ;;  %v4983_v58 = vpack.c.bf16 %v3868_v56, %v3866_v55  ;;  %v3898_v9 = vld [vmem:[%s6754_s2 + $0x200] sm:$0xff]  ;;  %v3927_v13 = vld [vmem:[%s6754_s2 + $0x238] sm:$0xff]  ;;  %v3926_v18 = vld [vmem:[%s6754_s2 + $0x230] sm:$0xff] }
  0x29   : > { %1047 = vmatprep.subr.mxu0 %v3807_v63  ;;  %4860 = vmatpush3.bf16.msra.mxu1 %v4857_v15  ;;  %v5005_v63 = vpack.c.bf16 %v3897_v61, %v3895_v60  ;;  %v5011_v11 = vpack.c.bf16 %v3900_v10, %v3898_v9  ;;  %v3929_v15 = vld [vmem:[%s6754_s2 + $0x248] sm:$0xff]  ;;  %v3928_v19 = vld [vmem:[%s6754_s2 + $0x240] sm:$0xff]  ;;  %v3931_v20 = vld [vmem:[%s6754_s2 + $0x258] sm:$0xff] }
  0x2a   : > { %4862 = vmatprep.subr.bf16.mxu1 %v4861_v27  ;;  %448 = vmatprep.mubr.f32.mxu1 %v5430_v7  ;;  %v5033_v16 = vpack.c.bf16 %v3929_v15, %v3927_v13  ;;  %v5880_v17 = vld [vmem:[%s5552_s7 + $0x42] sm:$0xff]  ;;  %v3930_v24 = vld [vmem:[%s6754_s2 + $0x250] sm:$0xff]  ;;  %v3961_v29 = vld [vmem:[%s6754_s2 + $0x298] sm:$0xff] }
  0x2b   : > { %3778 = vmatmul.mubr.msk.f32.gmra.mrb[4].mxu0 %vm359_vm2, %v5683_v5  ;;  %3742 = vmatmul.mubr.msk.f32.gmra.mrb[4].mxu1 %vm359_vm2, %v5764_v38  ;;  %v3933_v21 = vld [vmem:[%s6754_s2 + $0x268] sm:$0xff]  ;;  %v3932_v25 = vld [vmem:[%s6754_s2 + $0x260] sm:$0xff]  ;;  %v3960_v32 = vld [vmem:[%s6754_s2 + $0x290] sm:$0xff] }
  0x2c   : > { %880 = vmatprep.mubr.f32.mxu0 %v5430_v7  ;;  %1048 = vmatpush1.msra.mxu0 %v3806_v6  ;;  %v5007_v6 = vpack.c.bf16 %v3896_v2, %v3894_v1  ;;  %v3959_v28 = vld [vmem:[%s6754_s2 + $0x288] sm:$0xff]  ;;  %v333_v49 = vld [vmem:[%s6755_s3 + $0x18] sm:$0xff]  ;;  %v3784_v9 = vld [vmem:[%s6755_s3 + $0xc0] sm:$0xff] }
  0x2d   : > { %4950 = vmatprep.subr.bf16.mxu0 %v4949_v8  ;;  %4864 = vmatpush3.bf16.msra.mxu1 %v4861_v27  ;;  %v5009_v8 = vpack.c.bf16 %v3901_v4, %v3899_v3  ;;  %v3935_v27 = vld [vmem:[%s6754_s2 + $0x278] sm:$0xff]  ;;  %v3963_v33 = vld [vmem:[%s6754_s2 + $0x2a8] sm:$0xff]  ;;  %v3782_v3 = vld [vmem:[%s6755_s3 + $0xb0] sm:$0xff] }
  0x2e   : > { %4866 = vmatprep.subr.bf16.mxu1 %v4865_v34  ;;  %454 = vmatprep.mubr.f32.mxu1 %v5430_v7  ;;  %v3967_v43 = vld [vmem:[%s6754_s2 + $0x2c8] sm:$0xff]  ;;  %v337_v55 = vld [vmem:[%s6755_s3 + $0x38] sm:$0xff] }
  0x2f   : > { %3779 = vmatmul.mubr.msk.f32.gmra.mrb[6].mxu0 %vm359_vm2, %v5702_v14  ;;  %3743 = vmatmul.mubr.msk.f32.gmra.mrb[6].mxu1 %vm359_vm2, %v5785_v47  ;;  %v3781_v1 = vld [vmem:[%s6755_s3 + $0xa8] sm:$0xff]  ;;  %v3783_v4 = vld [vmem:[%s6755_s3 + $0xb8] sm:$0xff] }
  0x30   : > { %1103 = vmatprep.mubr.f32.mxu0 %v5430_v7  ;;  %4389 = vmatprep.mubr.msk.f32.mxu1 %vm272_vm0, %v344_v45  ;;  %v3785_v10 = vld [vmem:[%s6755_s3 + $0xc8] sm:$0xff] }
  0x31   : > { %4868 = vmatpush3.bf16.msra.mxu1 %v4865_v34  ;;  %v3965_v34 = vld [vmem:[%s6754_s2 + $0x2b8] sm:$0xff]  ;;  %v6040_v13 = vld [vmem:[#allocation2 + $0x2] sm:$0xff] }
  0x32   : > { %4870 = vmatprep.subr.bf16.mxu1 %v4869_v44  ;;  %v5065_v37 = vpack.c.bf16 %v3965_v34, %v3963_v33  ;;  %v3820_v34 = vld [vmem:[%s6755_s3 + $0x130] sm:$0xff] }
  0x33   : > { %3808 = vmatmul.mubr.msk.f32.vlgmr.msra.gmra.mrb[0].mxu0 %vm359_vm2, %v5582_v30  ;;  %v3839_v30 = vld [vmem:[%s6754_s2 + $0x188] sm:$0xff] }
  0x34   : > { %1109 = vmatprep.mubr.f32.mxu0 %v5430_v7  ;;  %4952 = vmatpush1.bf16.msra.mxu0 %v4951_v22  ;;  %v5035_v22 = vpack.c.bf16 %v3928_v19, %v3926_v18  ;;  %v3788_v18 = vld [vmem:[%s6755_s3 + $0xe0] sm:$0xff]  ;;  %v3789_v19 = vld [vmem:[%s6755_s3 + $0xe8] sm:$0xff] }
  0x35   : > { %4954 = vmatprep.subr.bf16.mxu0 %v4953_v23  ;;  %4872 = vmatpush3.bf16.msra.mxu1 %v4869_v44  ;;  %v5037_v23 = vpack.c.bf16 %v3933_v21, %v3931_v20  ;;  %v3925_v44 = vld [vmem:[%s5552_s7 + $0x51] sm:$0xff]  ;;  %v4917_v20 = vpack.c.bf16 %v3789_v19, %v3788_v18  ;;  %v3912_v18 = vld [vmem:[%s6755_s3 + $0x200] sm:$0xff]  ;;  %v3913_v19 = vld [vmem:[%s6755_s3 + $0x208] sm:$0xff] }
  0x36   : > { %4874 = vmatprep.subr.bf16.mxu1 %v5787_v48  ;;  %v3812_v21 = vld [vmem:[%s6755_s3 + $0xf0] sm:$0xff] }
  0x37   : > { %3809 = vmatmul.mubr.msk.f32.gmra.mrb[2].mxu0 %vm359_vm2, %v5597_v35 }
  0x38   : > { %1115 = vmatprep.mubr.f32.mxu0 %v5430_v7  ;;  %4956 = vmatpush1.bf16.msra.mxu0 %v4955_v31  ;;  %v5061_v31 = vpack.c.bf16 %v3961_v29, %v3959_v28  ;;  %v3816_v28 = vld [vmem:[%s6755_s3 + $0x110] sm:$0xff]  ;;  %v3817_v29 = vld [vmem:[%s6755_s3 + $0x118] sm:$0xff] }
  0x39   : > { %1287 = vmatprep.subr.mxu0 %v3839_v30  ;;  %v3893_v30 = vld [vmem:[%s5552_s7 + $0x50] sm:$0xff] }
  0x3b   : > { %3810 = vmatmul.mubr.msk.f32.gmra.mrb[4].mxu0 %vm359_vm2, %v5608_v39 }
  0x3c   : > { %1121 = vmatprep.mubr.f32.mxu0 %v5430_v7  ;;  %1288 = vmatpush1.msra.mxu0 %v3838_v40  ;;  %v3962_v40 = vld [vmem:[%s6754_s2 + $0x2a0] sm:$0xff] }
  0x3d   : > { %4978 = vmatprep.subr.bf16.mxu0 %v4977_v41  ;;  %v3964_v41 = vld [vmem:[%s6754_s2 + $0x2b0] sm:$0xff] }
  0x3e   : > { %v5067_v42 = vpack.c.bf16 %v3964_v41, %v3962_v40  ;;  %v3844_v40 = vld [vmem:[%s6755_s3 + $0x140] sm:$0xff]  ;;  %v3845_v41 = vld [vmem:[%s6755_s3 + $0x148] sm:$0xff] }
  0x3f   : > { %3811 = vmatmul.mubr.msk.f32.gmra.mrb[6].mxu0 %vm359_vm2, %v5782_v46 }
  0x40   : > { %1343 = vmatprep.mubr.f32.mxu0 %v5430_v7 }
  0x43   : > { %3840 = vmatmul.mubr.msk.f32.vlgmr.msra.gmra.mrb[0].mxu0 %vm359_vm2, %v3826_v26  ;;  %v5039_v26 = vpack.c.bf16 %v3932_v25, %v3930_v24  ;;  %v3814_v24 = vld [vmem:[%s6755_s3 + $0x100] sm:$0xff]  ;;  %v3815_v25 = vld [vmem:[%s6755_s3 + $0x108] sm:$0xff] }
  0x44   : > { %1349 = vmatprep.mubr.f32.mxu0 %v5430_v7  ;;  %4980 = vmatpush1.bf16.msra.mxu0 %v4979_v53  ;;  %v335_v53 = vld [vmem:[%s6755_s3 + $0x28] sm:$0xff] }
  0x45   : > { %4982 = vmatprep.subr.bf16.mxu0 %v4981_v54 }
  0x47   : > { %3841 = vmatmul.mubr.msk.f32.gmra.mrb[2].mxu0 %vm359_vm2, %v5764_v38 }
  0x48   : > { %1355 = vmatprep.mubr.f32.mxu0 %v5430_v7  ;;  %4984 = vmatpush1.bf16.msra.mxu0 %v4983_v58 }
  0x49   : > { %1527 = vmatprep.subr.mxu0 %v3871_v59  ;;  %v316_v59 = vld [vmem:[#allocation2] sm:$0xff] }
  0x4b   : > { %3842 = vmatmul.mubr.msk.f32.gmra.mrb[4].mxu0 %vm359_vm2, %v5785_v47 }
  0x4c   : > { %1361 = vmatprep.mubr.f32.mxu0 %v5430_v7  ;;  %1528 = vmatpush1.msra.mxu0 %v3870_v62  ;;  %v339_v62 = vld [vmem:[%s6755_s3 + $0x48] sm:$0xff] }
  0x4d   : > { %5006 = vmatprep.subr.bf16.mxu0 %v5005_v63 }
  0x4f   : > { %3843 = vmatmul.mubr.msk.f32.gmra.mrb[6].mxu0 %vm359_vm2, %v5835_v0 }
  0x50   : > { %1583 = vmatprep.mubr.f32.mxu0 %v5430_v7 }
  0x53   : > { %3872 = vmatmul.mubr.msk.f32.vlgmr.msra.gmra.mrb[0].mxu0 %vm359_vm2, %v5653_v57  ;;  %v3902_v57 = vld [vmem:[%s6754_s2 + $0x220] sm:$0xff] }
  0x54   : > { %1589 = vmatprep.mubr.f32.mxu0 %v5430_v7  ;;  %5008 = vmatpush1.bf16.msra.mxu0 %v5007_v6  ;;  %v4905_v6 = vpack.c.bf16 %v3783_v4, %v3782_v3  ;;  %v3884_v4 = vld [vmem:[%s6755_s3 + $0x1d0] sm:$0xff] }
  0x55   : > { %5010 = vmatprep.subr.bf16.mxu0 %v5009_v8 }
  0x57   : > { %3873 = vmatmul.mubr.msk.f32.gmra.mrb[2].mxu0 %vm359_vm2, %v5683_v5 }
  0x58   : > { %1595 = vmatprep.mubr.f32.mxu0 %v5430_v7  ;;  %5012 = vmatpush1.bf16.msra.mxu0 %v5011_v11 }
  0x59   : > { %1769 = vmatprep.subr.mxu0 %v3903_v12  ;;  %v4909_v12 = vpack.c.bf16 %v3785_v10, %v3784_v9  ;;  %v3908_v9 = vld [vmem:[%s6755_s3 + $0x1e0] sm:$0xff]  ;;  %v3909_v10 = vld [vmem:[%s6755_s3 + $0x1e8] sm:$0xff] }
  0x5b   : > { %3874 = vmatmul.mubr.msk.f32.gmra.mrb[4].mxu0 %vm359_vm2, %v5702_v14 }
  0x5c   : > { %1601 = vmatprep.mubr.f32.mxu0 %v5430_v7  ;;  %1770 = vmatpush1.msra.mxu0 %v3902_v57  ;;  %v3786_v57 = vld [vmem:[%s6755_s3 + $0xd0] sm:$0xff] }
  0x5d   : > { %5034 = vmatprep.subr.bf16.mxu0 %v5033_v16  ;;  %v3787_v16 = vld [vmem:[%s6755_s3 + $0xd8] sm:$0xff] }
  0x5f   : > { %3875 = vmatmul.mubr.msk.f32.gmra.mrb[6].mxu0 %vm359_vm2, %v5880_v17 }
  0x60   : > { %1825 = vmatprep.mubr.f32.mxu0 %v5430_v7 }
  0x63   : > { %3904 = vmatmul.mubr.msk.f32.vlgmr.msra.gmra.mrb[0].mxu0 %vm359_vm2, %v5597_v35  ;;  %v3934_v35 = vld [vmem:[%s6754_s2 + $0x270] sm:$0xff] }
  0x64   : > { %1831 = vmatprep.mubr.f32.mxu0 %v5430_v7  ;;  %5036 = vmatpush1.bf16.msra.mxu0 %v5035_v22  ;;  %v3813_v22 = vld [vmem:[%s6755_s3 + $0xf8] sm:$0xff] }
  0x65   : > { %5038 = vmatprep.subr.bf16.mxu0 %v5037_v23  ;;  %v4929_v23 = vpack.c.bf16 %v3813_v22, %v3812_v21  ;;  %v3914_v22 = vld [vmem:[%s6755_s3 + $0x210] sm:$0xff] }
  0x67   : > { %3905 = vmatmul.mubr.msk.f32.gmra.mrb[2].mxu0 %vm359_vm2, %v5608_v39  ;;  %v3958_v39 = vld [vmem:[%s6754_s2 + $0x280] sm:$0xff] }
  0x68   : > { %1837 = vmatprep.mubr.f32.mxu0 %v5430_v7  ;;  %5040 = vmatpush1.bf16.msra.mxu0 %v5039_v26  ;;  %v5063_v36 = vpack.c.bf16 %v3960_v32, %v3958_v39  ;;  %v4933_v26 = vpack.c.bf16 %v3815_v25, %v3814_v24  ;;  %v3818_v39 = vld [vmem:[%s6755_s3 + $0x120] sm:$0xff]  ;;  %v3819_v32 = vld [vmem:[%s6755_s3 + $0x128] sm:$0xff] }
  0x69   : > { %2009 = vmatprep.subr.mxu0 %v3935_v27  ;;  %v4941_v33 = vpack.c.bf16 %v3819_v32, %v3818_v39  ;;  %v3916_v25 = vld [vmem:[%s6755_s3 + $0x220] sm:$0xff]  ;;  %v3943_v39 = vld [vmem:[%s6755_s3 + $0x248] sm:$0xff] }
  0x6b   : > { %3906 = vmatmul.mubr.msk.f32.gmra.mrb[4].mxu0 %vm359_vm2, %v5782_v46 }
  0x6c   : > { %1843 = vmatprep.mubr.f32.mxu0 %v5430_v7  ;;  %2010 = vmatpush1.msra.mxu0 %v3934_v35 }
  0x6d   : > { %5062 = vmatprep.subr.bf16.mxu0 %v5061_v31  ;;  %v4937_v31 = vpack.c.bf16 %v3817_v29, %v3816_v28  ;;  %v3940_v28 = vld [vmem:[%s6755_s3 + $0x230] sm:$0xff] }
  0x6f   : > { %3907 = vmatmul.mubr.msk.f32.gmra.mrb[6].mxu0 %vm359_vm2, %v3893_v30 }
  0x70   : > { %2065 = vmatprep.mubr.f32.mxu0 %v5430_v7 }
  0x73   : > { %3936 = vmatmul.mubr.msk.f32.vlgmr.msra.gmra.mrb[0].mxu0 %vm359_vm2, %v5764_v38  ;;  %v3966_v38 = vld [vmem:[%s6754_s2 + $0x2c0] sm:$0xff] }
  0x74   : > { %2071 = vmatprep.mubr.f32.mxu0 %v5430_v7  ;;  %5064 = vmatpush1.bf16.msra.mxu0 %v5063_v36  ;;  %v3821_v36 = vld [vmem:[%s6755_s3 + $0x138] sm:$0xff] }
  0x75   : > { %5066 = vmatprep.subr.bf16.mxu0 %v5065_v37  ;;  %v4945_v37 = vpack.c.bf16 %v3821_v36, %v3820_v34  ;;  %v3945_v34 = vld [vmem:[%s6755_s3 + $0x258] sm:$0xff]  ;;  %v6245_v36 = vld [vmem:[#allocation2 + $0x50] sm:$0xff] }
  0x77   : > { %3937 = vmatmul.mubr.msk.f32.gmra.mrb[2].mxu0 %vm359_vm2, %v5785_v47  ;;  %v332_v47 = vld [vmem:[%s6755_s3 + $0x10] sm:$0xff] }
  0x78   : > { %2077 = vmatprep.mubr.f32.mxu0 %v5430_v7  ;;  %5068 = vmatpush1.bf16.msra.mxu0 %v5067_v42  ;;  %v4877_v51 = vpack.c.bf16 %v333_v49, %v332_v47  ;;  %v4957_v42 = vpack.c.bf16 %v3845_v41, %v3844_v40 }
  0x79   : > { %2249 = vmatprep.subr.mxu0 %v3967_v43  ;;  %v3846_v43 = vld [vmem:[%s6755_s3 + $0x150] sm:$0xff] }
  0x7b   : > { %3938 = vmatmul.mubr.msk.f32.gmra.mrb[4].mxu0 %vm359_vm2, %v5835_v0  ;;  %v3780_v0 = vld [vmem:[%s6755_s3 + $0xa0] sm:$0xff] }
  0x7c   : > { %2083 = vmatprep.mubr.f32.mxu0 %v5430_v7  ;;  %2250 = vmatpush1.msra.mxu0 %v3966_v38  ;;  %v4901_v2 = vpack.c.bf16 %v3781_v1, %v3780_v0  ;;  %v3847_v38 = vld [vmem:[%s6755_s3 + $0x158] sm:$0xff]  ;;  %v3882_v1 = vld [vmem:[%s6755_s3 + $0x1c0] sm:$0xff] }
  0x7f   : > { %3939 = vmatmul.mubr.msk.f32.gmra.mrb[6].mxu0 %vm359_vm2, %v3925_v44  ;;  %v4961_v44 = vpack.c.bf16 %v3847_v38, %v3846_v43  ;;  %v3947_v43 = vld [vmem:[%s6755_s3 + $0x268] sm:$0xff] }
  0x80   : > { %2305 = vmatprep.mubr.f32.mxu0 %v5430_v7 }
  0x83   : > { %v295_v45 = vpop.permute.xlu0 %294  ;;  %v299_v46 = vpop.permute.xlu1 %298  ;;  %3968 = vmatmul.mubr.msk.f32.vlgmr.msra.gmra.mrb[0].mxu0 %vm359_vm2, %v5683_v5  ;;  %v334_v5 = vld [vmem:[%s6755_s3 + $0x20] sm:$0xff] }
  0x84   : > { %308 = vst.msk [vmem:[#allocation2 + $0x11] sm:$0xff] %vm307_vm3, %v295_v45  ;;  %310 = vst.msk [vmem:[#allocation2 + $0x31] sm:$0xff] %vm307_vm3, %v299_v46  ;;  %2311 = vmatprep.mubr.f32.mxu0 %v5430_v7  ;;  %v4881_v54 = vpack.c.bf16 %v335_v53, %v334_v5  ;;  %v3848_v45 = vld [vmem:[%s6755_s3 + $0x160] sm:$0xff]  ;;  %v3849_v46 = vld [vmem:[%s6755_s3 + $0x168] sm:$0xff] }
  0x85   : > { %v4965_v49 = vpack.c.bf16 %v3849_v46, %v3848_v45  ;;  %v3852_v53 = vld [vmem:[%s6755_s3 + $0x180] sm:$0xff]  ;;  %v3948_v45 = vld [vmem:[%s6755_s3 + $0x270] sm:$0xff]  ;;  %v3949_v46 = vld [vmem:[%s6755_s3 + $0x278] sm:$0xff] }
  0x87   : > { %v297_v50 = vpop.permute.xlu0 %296  ;;  %3969 = vmatmul.mubr.msk.f32.gmra.mrb[2].mxu0 %vm359_vm2, %v5702_v14  ;;  %v336_v14 = vld [vmem:[%s6755_s3 + $0x30] sm:$0xff] }
  0x88   : > { %309 = vst.msk [vmem:[#allocation2 + $0x21] sm:$0xff] %vm307_vm3, %v297_v50  ;;  %2317 = vmatprep.mubr.f32.mxu0 %v5430_v7  ;;  %v301_v60 = vpop.permute.xlu1 %300  ;;  %v4885_v61 = vpack.c.bf16 %v337_v55, %v336_v14  ;;  %v3850_v50 = vld [vmem:[%s6755_s3 + $0x170] sm:$0xff] }
  0x89   : > { %311 = vst.msk [vmem:[#allocation2 + $0x41] sm:$0xff] %vm307_vm3, %v301_v60  ;;  %v3876_v55 = vld [vmem:[%s6755_s3 + $0x190] sm:$0xff]  ;;  %v3879_v60 = vld [vmem:[%s6755_s3 + $0x1a8] sm:$0xff] }
  0x8b   : > { %v5977_v52 = vld [vmem:[#allocation2 + $0x11] sm:$0xff]  ;;  %3970 = vmatmul.mubr.msk.f32.gmra.mrb[4].mxu0 %vm359_vm2, %v5880_v17  ;;  %v4913_v17 = vpack.c.bf16 %v3787_v16, %v3786_v57 }
  0x8c   : > { %4390 = vmatmul.mubr.msk.f32.vlgmr.msra.gmra.mrb[8].mxu1 %vm272_vm0, %v5977_v52  ;;  %v5999_v58 = vld [vmem:[#allocation2 + $0x31] sm:$0xff]  ;;  %2323 = vmatprep.mubr.f32.mxu0 %v5430_v7  ;;  %v338_v7 = vld [vmem:[%s6755_s3 + $0x40] sm:$0xff] }
  0x8d   : > { %4876 = vmatpush3.bf16.msra.mxu1 %v5787_v48  ;;  %v3957_v48 = vld [vmem:[%s5552_s7 + $0x52] sm:$0xff]  ;;  %v4889_v63 = vpack.c.bf16 %v339_v62, %v338_v7  ;;  %s271_s7 = scalar_lea.vmem %s6758_s6, %s4115_s15 }
  0x8e   : > { %4878 = vmatprep.subr.bf16.mxu1 %v4877_v51  ;;  %v317_v8 = vld [vmem:[#allocation2 + $0x10] sm:$0xff]  ;;  %v3881_v62 = vld [vmem:[%s6755_s3 + $0x1b8] sm:$0xff] }
  0x8f   : > { %v5997_v56 = vld [vmem:[#allocation2 + $0x21] sm:$0xff]  ;;  %3971 = vmatmul.mubr.msk.f32.gmra.mrb[6].mxu0 %vm359_vm2, %v3957_v48  ;;  %v6042_v15 = vld [vmem:[#allocation2 + $0x30] sm:$0xff]  ;;  %v3911_v16 = vld [vmem:[%s6755_s3 + $0x1f8] sm:$0xff] }
  0x90   : > { %4392 = vmatprep.mubr.msk.f32.mxu1 %vm272_vm0, %v5997_v56  ;;  %4623 = vmatprep.mubr.msk.f32.mxu0 %vm272_vm0, %v316_v59  ;;  %v6036_v11 = vld [vmem:[#allocation2 + $0x20] sm:$0xff]  ;;  %v6072_v27 = vld [vmem:[#allocation2 + $0x12] sm:$0xff] }
  0x91   : > { %4880 = vmatpush3.bf16.msra.mxu1 %v4877_v51  ;;  %v6082_v35 = vld [vmem:[#allocation2 + $0x22] sm:$0xff]  ;;  %v6086_v30 = vld [vmem:[#allocation2 + $0x32] sm:$0xff] }
  0x92   : > { %4882 = vmatprep.subr.bf16.mxu1 %v4881_v54  ;;  %4393 = vmatmul.mubr.msk.f32.gmra.mrb[10].mxu1 %vm272_vm0, %v5999_v58  ;;  %v6125_v47 = vld [vmem:[#allocation2 + $0x40] sm:$0xff]  ;;  %v3851_v51 = vld [vmem:[%s6755_s3 + $0x178] sm:$0xff]  ;;  %v3880_v7 = vld [vmem:[%s6755_s3 + $0x1b0] sm:$0xff] }
  0x93   : > { %4415 = vmatprep.mubr.msk.f32.mxu1 %vm272_vm0, %v316_v59  ;;  %v4969_v5 = vpack.c.bf16 %v3851_v51, %v3850_v50  ;;  %v3878_v59 = vld [vmem:[%s6755_s3 + $0x1a0] sm:$0xff]  ;;  %v3910_v57 = vld [vmem:[%s6755_s3 + $0x1f0] sm:$0xff] }
  0x94   : > { %v6165_v0 = vld [vmem:[#allocation2 + $0x41] sm:$0xff] }
  0x95   : > { %4884 = vmatpush3.bf16.msra.mxu1 %v4881_v54  ;;  %v3853_v54 = vld [vmem:[%s6755_s3 + $0x188] sm:$0xff] }
  0x96   : > { %4886 = vmatprep.subr.bf16.mxu1 %v4885_v61  ;;  %v4973_v14 = vpack.c.bf16 %v3853_v54, %v3852_v53  ;;  %v6205_v21 = vld [vmem:[#allocation2 + $0x42] sm:$0xff]  ;;  %v3974_v53 = vld [vmem:[%s6755_s3 + $0x290] sm:$0xff]  ;;  %v3975_v54 = vld [vmem:[%s6755_s3 + $0x298] sm:$0xff] }
  0x99   : > { %4888 = vmatpush3.bf16.msra.mxu1 %v4885_v61  ;;  %v4989_v61 = vpack.c.bf16 %v3879_v60, %v3878_v59  ;;  %v3977_v59 = vld [vmem:[%s6755_s3 + $0x2a8] sm:$0xff]  ;;  %v6285_v60 = vld [vmem:[#allocation2 + $0x51] sm:$0xff] }
  0x9a   : > { %4890 = vmatprep.subr.bf16.mxu1 %v4889_v63 }
  0x9d   : > { %4892 = vmatpush3.bf16.msra.mxu1 %v4889_v63  ;;  %v4993_v63 = vpack.c.bf16 %v3881_v62, %v3880_v7  ;;  %v3978_v7 = vld [vmem:[%s6755_s3 + $0x2b0] sm:$0xff]  ;;  %v3979_v62 = vld [vmem:[%s6755_s3 + $0x2b8] sm:$0xff] }
  0x9e   : > { %4902 = vmatprep.subr.bf16.mxu1 %v4901_v2 }
  0xa0   : > { %4416 = vmatmul.mubr.msk.f32.vlgmr.msra.gmra.mrb[8].mxu1 %vm272_vm0, %v317_v8 }
  0xa1   : > { %4418 = vmatprep.mubr.msk.f32.mxu1 %vm272_vm0, %v6036_v11  ;;  %4904 = vmatpush3.bf16.msra.mxu1 %v4901_v2  ;;  %v3883_v2 = vld [vmem:[%s6755_s3 + $0x1c8] sm:$0xff] }
  0xa2   : > { %4906 = vmatprep.subr.bf16.mxu1 %v4905_v6  ;;  %v4997_v3 = vpack.c.bf16 %v3883_v2, %v3882_v1 }
  0xa4   : > { %4419 = vmatmul.mubr.msk.f32.gmra.mrb[10].mxu1 %vm272_vm0, %v6042_v15 }
  0xa5   : > { %4908 = vmatpush3.bf16.msra.mxu1 %v4905_v6  ;;  %4441 = vmatprep.mubr.msk.f32.mxu1 %vm272_vm0, %v6040_v13  ;;  %v3885_v6 = vld [vmem:[%s6755_s3 + $0x1d8] sm:$0xff] }
  0xa6   : > { %4910 = vmatprep.subr.bf16.mxu1 %v4909_v12 }
  0xa9   : > { %4912 = vmatpush3.bf16.msra.mxu1 %v4909_v12  ;;  %v5013_v12 = vpack.c.bf16 %v3909_v10, %v3908_v9 }
  0xaa   : > { %4914 = vmatprep.subr.bf16.mxu1 %v4913_v17 }
  0xad   : > { %4916 = vmatpush3.bf16.msra.mxu1 %v4913_v17  ;;  %v5017_v17 = vpack.c.bf16 %v3911_v16, %v3910_v57 }
  0xae   : > { %4918 = vmatprep.subr.bf16.mxu1 %v4917_v20 }
  0xb1   : > { %4920 = vmatpush3.bf16.msra.mxu1 %v4917_v20  ;;  %v5021_v20 = vpack.c.bf16 %v3913_v19, %v3912_v18 }
  0xb2   : > { %4930 = vmatprep.subr.bf16.mxu1 %v4929_v23 }
  0xb4   : > { %4442 = vmatmul.mubr.msk.f32.vlgmr.msra.gmra.mrb[8].mxu1 %vm272_vm0, %v6072_v27 }
  0xb5   : > { %4444 = vmatprep.mubr.msk.f32.mxu1 %vm272_vm0, %v6082_v35  ;;  %4932 = vmatpush3.bf16.msra.mxu1 %v4929_v23  ;;  %v3915_v23 = vld [vmem:[%s6755_s3 + $0x218] sm:$0xff] }
  0xb6   : > { %4934 = vmatprep.subr.bf16.mxu1 %v4933_v26  ;;  %v5025_v24 = vpack.c.bf16 %v3915_v23, %v3914_v22  ;;  %v2552_v22 = vld [vmem:[%s6756_s4] sm:$0xff]  ;;  %v2553_v23 = vld [vmem:[%s6756_s4 + $0x8] sm:$0xff] }
  0xb8   : > { %4445 = vmatmul.mubr.msk.f32.gmra.mrb[10].mxu1 %vm272_vm0, %v6086_v30 }
  0xb9   : > { %4936 = vmatpush3.bf16.msra.mxu1 %v4933_v26  ;;  %4467 = vmatprep.mubr.msk.f32.mxu1 %vm272_vm0, %v317_v8  ;;  %v5001_v8 = vpack.c.bf16 %v3885_v6, %v3884_v4  ;;  %v3917_v26 = vld [vmem:[%s6755_s3 + $0x228] sm:$0xff] }
  0xba   : > { %4938 = vmatprep.subr.bf16.mxu1 %v4937_v31 }
  0xbd   : > { %4940 = vmatpush3.bf16.msra.mxu1 %v4937_v31  ;;  %v3942_v31 = vld [vmem:[%s6755_s3 + $0x240] sm:$0xff] }
  0xbe   : > { %4942 = vmatprep.subr.bf16.mxu1 %v4941_v33  ;;  %v5045_v32 = vpack.c.bf16 %v3943_v39, %v3942_v31  ;;  %v4030_v31 = vld [vmem:[%s6756_s4 + $0x100] sm:$0xff]  ;;  %v4031_v39 = vld [vmem:[%s6756_s4 + $0x108] sm:$0xff] }
  0xc1   : > { %4944 = vmatpush3.bf16.msra.mxu1 %v4941_v33  ;;  %v3944_v33 = vld [vmem:[%s6755_s3 + $0x250] sm:$0xff] }
  0xc2   : > { %4946 = vmatprep.subr.bf16.mxu1 %v4945_v37  ;;  %v5049_v40 = vpack.c.bf16 %v3945_v34, %v3944_v33  ;;  %v5153_v33 = vpack.c.bf16 %v4031_v39, %v4030_v31  ;;  %v2557_v34 = vld [vmem:[%s6756_s4 + $0x28] sm:$0xff]  ;;  %v6411_v31 = vld [vmem:[%s5535_s19] sm:$0xff] }
  0xc5   : > { %4948 = vmatpush3.bf16.msra.mxu1 %v4945_v37 }
  0xc6   : > { %4958 = vmatprep.subr.bf16.mxu1 %v4957_v42 }
  0xc8   : > { %4468 = vmatmul.mubr.msk.f32.vlgmr.msra.gmra.mrb[8].mxu1 %vm272_vm0, %v6036_v11 }
  0xc9   : > { %4470 = vmatprep.mubr.msk.f32.mxu1 %vm272_vm0, %v6042_v15  ;;  %4960 = vmatpush3.bf16.msra.mxu1 %v4957_v42  ;;  %v3946_v42 = vld [vmem:[%s6755_s3 + $0x260] sm:$0xff] }
  0xca   : > { %4962 = vmatprep.subr.bf16.mxu1 %v4961_v44  ;;  %v5053_v38 = vpack.c.bf16 %v3947_v43, %v3946_v42 }
  0xcc   : > { %4471 = vmatmul.mubr.msk.f32.gmra.mrb[10].mxu1 %vm272_vm0, %v6125_v47 }
  0xcd   : > { %4964 = vmatpush3.bf16.msra.mxu1 %v4961_v44  ;;  %4493 = vmatprep.mubr.msk.f32.mxu1 %vm272_vm0, %v5977_v52  ;;  %v3877_v52 = vld [vmem:[%s6755_s3 + $0x198] sm:$0xff] }
  0xce   : > { %4966 = vmatprep.subr.bf16.mxu1 %v4965_v49  ;;  %v4985_v48 = vpack.c.bf16 %v3877_v52, %v3876_v55  ;;  %v5073_v52 = vpack.c.bf16 %v3975_v54, %v3974_v53 }
  0xd1   : > { %4968 = vmatpush3.bf16.msra.mxu1 %v4965_v49  ;;  %v3972_v49 = vld [vmem:[%s6755_s3 + $0x280] sm:$0xff] }
  0xd2   : > { %4970 = vmatprep.subr.bf16.mxu1 %v4969_v5 }
  0xd5   : > { %4972 = vmatpush3.bf16.msra.mxu1 %v4969_v5 }
  0xd6   : > { %4974 = vmatprep.subr.bf16.mxu1 %v4973_v14 }
  0xd9   : > { %4976 = vmatpush3.bf16.msra.mxu1 %v4973_v14 }
  0xda   : > { %4986 = vmatprep.subr.bf16.mxu1 %v4985_v48 }
  0xdc   : > { %4494 = vmatmul.mubr.msk.f32.vlgmr.msra.gmra.mrb[8].mxu1 %vm272_vm0, %v5997_v56 }
  0xdd   : > { %4496 = vmatprep.mubr.msk.f32.mxu1 %vm272_vm0, %v5999_v58  ;;  %4988 = vmatpush3.bf16.msra.mxu1 %v4985_v48  ;;  %v3976_v48 = vld [vmem:[%s6755_s3 + $0x2a0] sm:$0xff] }
  0xde   : > { %4990 = vmatprep.subr.bf16.mxu1 %v4989_v61 }
  0xe0   : > { %4497 = vmatmul.mubr.msk.f32.gmra.mrb[10].mxu1 %vm272_vm0, %v6165_v0 }
  0xe1   : > { %4992 = vmatpush3.bf16.msra.mxu1 %v4989_v61  ;;  %4519 = vmatprep.mubr.msk.f32.mxu1 %vm272_vm0, %v6072_v27  ;;  %v5029_v27 = vpack.c.bf16 %v3917_v26, %v3916_v25  ;;  %v5077_v61 = vpack.c.bf16 %v3977_v59, %v3976_v48  ;;  %v5089_v25 = vpack.c.bf16 %v2553_v23, %v2552_v22  ;;  %v4029_v26 = vld [vmem:[%s6756_s4 + $0xf8] sm:$0xff]  ;;  %v2558_v59 = vld [vmem:[%s6756_s4 + $0x30] sm:$0xff] }
  0xe2   : > { %4994 = vmatprep.subr.bf16.mxu1 %v4993_v63  ;;  %v4001_v22 = vld [vmem:[%s6756_s4 + $0x58] sm:$0xff] }
  0xe3   : > { %5090 = vmatprep.subr.bf16.mxu0 %v5089_v25 }
  0xe4   : > { %5092 = vmatpush3.bf16.msra.mxu0 %v5089_v25  ;;  %v4057_v25 = vld [vmem:[%s6756_s4 + $0x198] sm:$0xff] }
  0xe5   : > { %4996 = vmatpush3.bf16.msra.mxu1 %v4993_v63  ;;  %v3980_v63 = vld [vmem:[%s6755_s3 + $0x2c0] sm:$0xff] }
  0xe6   : > { %4998 = vmatprep.subr.bf16.mxu1 %v4997_v3 }
  0xe9   : > { %5000 = vmatpush3.bf16.msra.mxu1 %v4997_v3 }
  0xea   : > { %5002 = vmatprep.subr.bf16.mxu1 %v5001_v8 }
  0xed   : > { %5004 = vmatpush3.bf16.msra.mxu1 %v5001_v8 }
  0xee   : > { %5014 = vmatprep.subr.bf16.mxu1 %v5013_v12 }
  0xf0   : > { %4520 = vmatmul.mubr.msk.f32.vlgmr.msra.gmra.mrb[8].mxu1 %vm272_vm0, %v6082_v35 }
  0xf1   : > { %4522 = vmatprep.mubr.msk.f32.mxu1 %vm272_vm0, %v6086_v30  ;;  %5016 = vmatpush3.bf16.msra.mxu1 %v5013_v12 }
  0xf2   : > { %5018 = vmatprep.subr.bf16.mxu1 %v5017_v17 }
  0xf4   : > { %4523 = vmatmul.mubr.msk.f32.gmra.mrb[10].mxu1 %vm272_vm0, %v6205_v21 }
  0xf5   : > { %5020 = vmatpush3.bf16.msra.mxu1 %v5017_v17  ;;  %4545 = vmatprep.mubr.msk.f32.mxu1 %vm272_vm0, %v6036_v11  ;;  %v3941_v11 = vld [vmem:[%s6755_s3 + $0x238] sm:$0xff]  ;;  %v438_v37 = vpop.f32.mrb[0].mxu1 }
  0xf6   : > { %5022 = vmatprep.subr.bf16.mxu1 %v5021_v20  ;;  %v5041_v29 = vpack.c.bf16 %v3941_v11, %v3940_v28  ;;  %v440_v41 = vpop.f32.mrb[1].mxu1  ;;  %v2555_v28 = vld [vmem:[%s6756_s4 + $0x18] sm:$0xff] }
  0xf9   : > { %5024 = vmatpush3.bf16.msra.mxu1 %v5021_v20 }
  0xfa   : > { %5026 = vmatprep.subr.bf16.mxu1 %v5025_v24 }
  0xfd   : > { %5028 = vmatpush3.bf16.msra.mxu1 %v5025_v24  ;;  %v4028_v24 = vld [vmem:[%s6756_s4 + $0xf0] sm:$0xff] }
  0xfe   : > { %5030 = vmatprep.subr.bf16.mxu1 %v5029_v27  ;;  %v5149_v11 = vpack.c.bf16 %v4029_v26, %v4028_v24  ;;  %v4056_v24 = vld [vmem:[%s6756_s4 + $0x190] sm:$0xff] }
 0x101   : > { %5032 = vmatpush3.bf16.msra.mxu1 %v5029_v27  ;;  %v2554_v27 = vld [vmem:[%s6756_s4 + $0x10] sm:$0xff] }
 0x102   : > { %5042 = vmatprep.subr.bf16.mxu1 %v5041_v29 }
 0x104   : > { %4546 = vmatmul.mubr.msk.f32.vlgmr.msra.gmra.mrb[8].mxu1 %vm272_vm0, %v6042_v15  ;;  %v444_v15 = vpop.f32.mrb[2].mxu1 }
 0x105   : > { %4548 = vmatprep.mubr.msk.f32.mxu1 %vm272_vm0, %v6125_v47  ;;  %5044 = vmatpush3.bf16.msra.mxu1 %v5041_v29  ;;  %v446_v44 = vpop.f32.mrb[3].mxu1  ;;  %v5057_v47 = vpack.c.bf16 %v3949_v46, %v3948_v45  ;;  %v5093_v29 = vpack.c.bf16 %v2555_v28, %v2554_v27  ;;  %v5189_v27 = vpack.c.bf16 %v4057_v25, %v4056_v24  ;;  %v4084_v24 = vld [vmem:[%s6756_s4 + $0x230] sm:$0xff]  ;;  %v4085_v25 = vld [vmem:[%s6756_s4 + $0x238] sm:$0xff] }
 0x106   : > { %5046 = vmatprep.subr.bf16.mxu1 %v5045_v32  ;;  %v450_v50 = vpop.f32.mrb[4].mxu1 }
 0x107   : > { %v452_v51 = vpop.f32.mrb[5].mxu1  ;;  %5094 = vmatprep.subr.bf16.mxu0 %v5093_v29 }
 0x108   : > { %4549 = vmatmul.mubr.msk.f32.gmra.mrb[10].mxu1 %vm272_vm0, %v6245_v36  ;;  %v456_v14 = vpop.f32.mrb[6].mxu1  ;;  %5096 = vmatpush3.bf16.msra.mxu0 %v5093_v29 }
 0x109   : > { %5048 = vmatpush3.bf16.msra.mxu1 %v5045_v32  ;;  %4571 = vmatprep.mubr.msk.f32.mxu1 %vm272_vm0, %v5997_v56  ;;  %v3973_v56 = vld [vmem:[%s6755_s3 + $0x288] sm:$0xff]  ;;  %v458_v55 = vpop.f32.mrb[7].mxu1  ;;  %v2556_v32 = vld [vmem:[%s6756_s4 + $0x20] sm:$0xff] }
 0x10a   : > { %5050 = vmatprep.subr.bf16.mxu1 %v5049_v40  ;;  %v5069_v5 = vpack.c.bf16 %v3973_v56, %v3972_v49 }
 0x10d   : > { %5052 = vmatpush3.bf16.msra.mxu1 %v5049_v40  ;;  %v4033_v40 = vld [vmem:[%s6756_s4 + $0x118] sm:$0xff] }
 0x10e   : > { %5054 = vmatprep.subr.bf16.mxu1 %v5053_v38 }
 0x111   : > { %5056 = vmatpush3.bf16.msra.mxu1 %v5053_v38 }
 0x112   : > { %5058 = vmatprep.subr.bf16.mxu1 %v5057_v47 }
 0x115   : > { %5060 = vmatpush3.bf16.msra.mxu1 %v5057_v47 }
 0x116   : > { %5070 = vmatprep.subr.bf16.mxu1 %v5069_v5 }
 0x118   : > { %4572 = vmatmul.mubr.msk.f32.vlgmr.msra.gmra.mrb[8].mxu1 %vm272_vm0, %v5999_v58  ;;  %v5081_v58 = vpack.c.bf16 %v3979_v62, %v3978_v7 }
 0x119   : > { %4574 = vmatprep.mubr.msk.f32.mxu1 %vm272_vm0, %v6165_v0  ;;  %5072 = vmatpush3.bf16.msra.mxu1 %v5069_v5  ;;  %v3981_v0 = vld [vmem:[%s6755_s3 + $0x2c8] sm:$0xff] }
 0x11a   : > { %5074 = vmatprep.subr.bf16.mxu1 %v5073_v52  ;;  %v5085_v1 = vpack.c.bf16 %v3981_v0, %v3980_v63  ;;  %v4034_v63 = vld [vmem:[%s6756_s4 + $0x120] sm:$0xff]  ;;  %v4035_v0 = vld [vmem:[%s6756_s4 + $0x128] sm:$0xff] }
 0x11c   : > { %4575 = vmatmul.mubr.msk.f32.gmra.mrb[10].mxu1 %vm272_vm0, %v6285_v60 }
 0x11d   : > { %5076 = vmatpush3.bf16.msra.mxu1 %v5073_v52  ;;  %4597 = vmatprep.mubr.msk.f32.mxu1 %vm272_vm0, %v6082_v35  ;;  %v6307_v35 = vld [vmem:[#allocation2 + $0x52] sm:$0xff] }
 0x11e   : > { %5078 = vmatprep.subr.bf16.mxu1 %v5077_v61 }
 0x121   : > { %5080 = vmatpush3.bf16.msra.mxu1 %v5077_v61  ;;  %v2559_v61 = vld [vmem:[%s6756_s4 + $0x38] sm:$0xff] }
 0x122   : > { %5082 = vmatprep.subr.bf16.mxu1 %v5081_v58 }
 0x125   : > { %5084 = vmatpush3.bf16.msra.mxu1 %v5081_v58  ;;  %v5101_v58 = vpack.c.bf16 %v2559_v61, %v2558_v59  ;;  %v4060_v59 = vld [vmem:[%s6756_s4 + $0x1b0] sm:$0xff]  ;;  %v4061_v61 = vld [vmem:[%s6756_s4 + $0x1b8] sm:$0xff] }
 0x126   : > { %5086 = vmatprep.subr.bf16.mxu1 %v5085_v1 }
 0x129   : > { %5088 = vmatpush3.bf16.msra.mxu1 %v5085_v1 }
 0x12a   : > { %5150 = vmatprep.subr.bf16.mxu1 %v5149_v11 }
 0x12c   : > { %4598 = vmatmul.mubr.msk.f32.vlgmr.msra.gmra.mrb[8].mxu1 %vm272_vm0, %v6086_v30 }
 0x12d   : > { %4600 = vmatprep.mubr.msk.f32.mxu1 %vm272_vm0, %v6205_v21  ;;  %5152 = vmatpush3.bf16.msra.mxu1 %v5149_v11  ;;  %v6407_v11 = vld [vmem:[%s5535_s19 + $0x8] sm:$0xff] }
 0x12e   : > { %5154 = vmatprep.subr.bf16.mxu1 %v5153_v33 }
 0x130   : > { %4601 = vmatmul.mubr.msk.f32.gmra.mrb[10].mxu1 %vm272_vm0, %v6307_v35 }
 0x131   : > { %5156 = vmatpush3.bf16.msra.mxu1 %v5153_v33 }
 0x156   : > { %v2307_v2 = vpop.f32.mrb[0].mxu0 }
 0x157   : > { %v5269_v3 = vadd.f32 %v2307_v2, %v438_v37  ;;  %v2309_v4 = vpop.f32.mrb[1].mxu0  ;;  %v4032_v37 = vld [vmem:[%s6756_s4 + $0x110] sm:$0xff]  ;;  %v5161_v2 = vpack.c.bf16 %v4035_v0, %v4034_v63  ;;  %v4007_v63 = vld [vmem:[%s6756_s4 + $0x88] sm:$0xff]  ;;  %v5197_v0 = vpack.c.bf16 %v4061_v61, %v4060_v59 }
 0x158   : > { %v6311_v6 = vadd.f32 %v2309_v4, %v440_v41  ;;  %v5097_v41 = vpack.c.bf16 %v2557_v34, %v2556_v32  ;;  %v5157_v42 = vpack.c.bf16 %v4033_v40, %v4032_v37  ;;  %v2560_v4 = vld [vmem:[%s6756_s4 + $0x40] sm:$0xff]  ;;  %v6417_v34 = vld [vmem:[%s5535_s19 + $0x18] sm:$0xff]  ;;  %v6421_v40 = vld [vmem:[%s5535_s19 + $0x10] sm:$0xff] }
 0x159   : > { %v4091_v59 = vld [vmem:[%s6756_s4 + $0x268] sm:$0xff] }
 0x15a   : > { %v2313_v8 = vpop.f32.mrb[2].mxu0  ;;  %5098 = vmatprep.subr.bf16.mxu0 %v5097_v41  ;;  %5158 = vmatprep.subr.bf16.mxu1 %v5157_v42 }
 0x15b   : > { %v5271_v9 = vadd.f32 %v2313_v8, %v444_v15  ;;  %v2315_v10 = vpop.f32.mrb[3].mxu0  ;;  %5100 = vmatpush3.bf16.msra.mxu0 %v5097_v41  ;;  %5160 = vmatpush3.bf16.msra.mxu1 %v5157_v42  ;;  %v3986_v15 = vld [vmem:[%s6757_s5] ss:$0 sm:$0xff]  ;;  %v2561_v8 = vld [vmem:[%s6756_s4 + $0x48] sm:$0xff]  ;;  %v3987_v42 = vld [vmem:[%s6757_s5 + $0x1] ss:$0 sm:$0xff] }
 0x15c   : > { %v6313_v12 = vadd.f32 %v2315_v10, %v446_v44  ;;  %5102 = vmatprep.subr.bf16.mxu0 %v5101_v58  ;;  %5162 = vmatprep.subr.bf16.mxu1 %v5161_v2 }
 0x15e   : > { %v2319_v57 = vpop.f32.mrb[4].mxu0 }
 0x15f   : > { %v5273_v30 = vadd.f32 %v2319_v57, %v450_v50  ;;  %v2321_v16 = vpop.f32.mrb[5].mxu0  ;;  %5104 = vmatpush3.bf16.msra.mxu0 %v5101_v58  ;;  %5164 = vmatpush3.bf16.msra.mxu1 %v5161_v2  ;;  %v5105_v57 = vpack.c.bf16 %v2561_v8, %v2560_v4  ;;  %v4006_v58 = vld [vmem:[%s6756_s4 + $0x80] sm:$0xff] }
 0x160   : > { %v6315_v17 = vadd.f32 %v2321_v16, %v452_v51  ;;  %v4037_v16 = vld [vmem:[%s6756_s4 + $0x138] sm:$0xff]  ;;  %v4062_v2 = vld [vmem:[%s6756_s4 + $0x1c0] sm:$0xff]  ;;  %v5121_v8 = vpack.c.bf16 %v4007_v63, %v4006_v58  ;;  %v4023_v58 = vld [vmem:[%s6756_s4 + $0xe8] sm:$0xff] }
 0x161   : > { %5106 = vmatprep.subr.bf16.mxu0 %v5105_v57 }
 0x162   : > { %v2325_v18 = vpop.f32.mrb[6].mxu0 }
 0x163   : > { %v5275_v19 = vadd.f32 %v2325_v18, %v456_v14  ;;  %v2327_v20 = vpop.f32.mrb[7].mxu0  ;;  %5108 = vmatpush3.bf16.msra.mxu0 %v5105_v57 }
 0x164   : > { %v6317_v21 = vadd.f32 %v2327_v20, %v458_v55  ;;  %v4000_v20 = vld [vmem:[%s6756_s4 + $0x50] sm:$0xff] }
 0x165   : > { %v5109_v23 = vpack.c.bf16 %v4001_v22, %v4000_v20  ;;  %v4014_v20 = vld [vmem:[%s6756_s4 + $0xa0] sm:$0xff]  ;;  %v4015_v22 = vld [vmem:[%s6756_s4 + $0xa8] sm:$0xff] }
 0x167   : > { %5110 = vmatprep.subr.bf16.mxu0 %v5109_v23 }
 0x1ff   : > { %v4599_v43 = vpop.f32.mrb[8].mxu1 }
 0x200   : > { %v6358_v38 = vadd.f32 %v5271_v9, %v4599_v43  ;;  %v2427_v44 = vpop.f32.mrb[9].mxu1 }
 0x201   : > { %v6360_v45 = vadd.f32 %v5269_v3, %v2427_v44 }
 0x202   : > { %v2460_v46 = vadd.f32 %v3986_v15, %v6358_v38 }
 0x203   : > { %v2459_v47 = vadd.f32 %v3986_v15, %v6360_v45  ;;  %v4602_v49 = vpop.f32.mrb[10].mxu1 }
 0x204   : > { %v3989_v56 = vmul.f32 -1.442695, %v2460_v46  ;;  %v6364_v50 = vadd.f32 %v5275_v19, %v4602_v49  ;;  %v2437_v51 = vpop.f32.mrb[11].mxu1  ;;  %v4003_v49 = vld [vmem:[%s6756_s4 + $0x68] sm:$0xff] }
 0x205   : > { %v3988_v5 = vmul.f32 -1.442695, %v2459_v47  ;;  %v6366_v53 = vadd.f32 %v5273_v30, %v2437_v51  ;;  %v4036_v30 = vld [vmem:[%s6756_s4 + $0x130] sm:$0xff]  ;;  %v4002_v47 = vld [vmem:[%s6756_s4 + $0x60] sm:$0xff]  ;;  %v4059_v51 = vld [vmem:[%s6756_s4 + $0x1a8] sm:$0xff] }
 0x206   : > { %5377 = vpow2.f32 %v3989_v56  ;;  %v2462_v54 = vadd.f32 %v3986_v15, %v6364_v50  ;;  %v5165_v19 = vpack.c.bf16 %v4037_v16, %v4036_v30  ;;  %v4058_v56 = vld [vmem:[%s6756_s4 + $0x1a0] sm:$0xff]  ;;  %v4064_v16 = vld [vmem:[%s6756_s4 + $0x1d0] sm:$0xff] }
 0x207   : > { %5379 = vpow2.f32 %v3988_v5  ;;  %v2461_v14 = vadd.f32 %v3986_v15, %v6366_v53  ;;  %v5421_v30 = vld [vmem:[#allocation2 + $0x1] sm:$0xff] }
 0x208   : > { %v3991_v55 = vmul.f32 -1.442695, %v2462_v54  ;;  %5166 = vmatprep.subr.bf16.mxu1 %v5165_v19  ;;  %v5113_v54 = vpack.c.bf16 %v4003_v49, %v4002_v47  ;;  %v4089_v47 = vld [vmem:[%s6756_s4 + $0x258] sm:$0xff] }
 0x209   : > { %v3990_v52 = vmul.f32 -1.442695, %v2461_v14  ;;  %5168 = vmatpush3.bf16.msra.mxu1 %v5165_v19  ;;  %v4004_v14 = vld [vmem:[%s6756_s4 + $0x70] sm:$0xff] }
 0x20a   : > { %5381 = vpow2.f32 %v3991_v55  ;;  %5190 = vmatprep.subr.bf16.mxu1 %v5189_v27  ;;  %v4005_v55 = vld [vmem:[%s6756_s4 + $0x78] sm:$0xff] }
 0x20b   : > { %5383 = vpow2.f32 %v3990_v52 }
 0x210   : > { %v5378_v48 = vpop.eup %5377 }
 0x211   : > { %v5380_v7 = vpop.eup %5379  ;;  %v2489_v62 = vadd.f32 1.0, %v5378_v48  ;;  %v5193_v48 = vpack.c.bf16 %v4059_v51, %v4058_v56 }
 0x212   : > { %v2488_v1 = vadd.f32 1.0, %v5380_v7  ;;  %v5117_v7 = vpack.c.bf16 %v4005_v55, %v4004_v14 }
 0x213   : > { %5385 = vrcp.f32 %v2489_v62 }
 0x214   : > { %v5382_v3 = vpop.eup %5381  ;;  %5387 = vrcp.f32 %v2488_v1 }
 0x215   : > { %v5384_v9 = vpop.eup %5383  ;;  %v2491_v10 = vadd.f32 1.0, %v5382_v3  ;;  %v4063_v3 = vld [vmem:[%s6756_s4 + $0x1c8] sm:$0xff] }
 0x216   : > { %v2490_v18 = vadd.f32 1.0, %v5384_v9  ;;  %v4008_v9 = vld [vmem:[%s6756_s4 + $0x90] sm:$0xff]  ;;  %v5201_v57 = vpack.c.bf16 %v4063_v3, %v4062_v2  ;;  %v4042_v3 = vld [vmem:[%s6756_s4 + $0x140] sm:$0xff] }
 0x217   : > { %5389 = vrcp.f32 %v2491_v10  ;;  %v4009_v10 = vld [vmem:[%s6756_s4 + $0x98] sm:$0xff] }
 0x218   : > { %5391 = vrcp.f32 %v2490_v18  ;;  %v4065_v18 = vld [vmem:[%s6756_s4 + $0x1d8] sm:$0xff]  ;;  %v5125_v19 = vpack.c.bf16 %v4009_v10, %v4008_v9 }
 0x21d   : > { %v5386_v26 = vpop.eup %5385 }
 0x21e   : > { %v5388_v28 = vpop.eup %5387  ;;  %v2525_v29 = vmul.f32 %v6407_v11, %v5386_v26  ;;  %v5129_v26 = vpack.c.bf16 %v4015_v22, %v4014_v20 }
 0x21f   : > { %v2524_v39 = vmul.f32 %v6411_v31, %v5388_v28  ;;  %v4017_v28 = vld [vmem:[%s6756_s4 + $0xb8] sm:$0xff] }
 0x220   : > { %2534 = vrot.lane.b32.xlu1 %v2525_v29, %s5431_s28  ;;  %v5229_v29 = vpack.c.bf16 %v4085_v25, %v4084_v24  ;;  %v4050_v25 = vld [vmem:[%s6756_s4 + $0x180] sm:$0xff] }
 0x221   : > { %v5390_v32 = vpop.eup %5389  ;;  %2532 = vrot.lane.b32.xlu0 %v2524_v39, %s5431_s28  ;;  %v4086_v39 = vld [vmem:[%s6756_s4 + $0x240] sm:$0xff] }
 0x222   : > { %v5392_v33 = vpop.eup %5391  ;;  %v2527_v37 = vmul.f32 %v6417_v34, %v5390_v32  ;;  %v4087_v32 = vld [vmem:[%s6756_s4 + $0x248] sm:$0xff] }
 0x223   : > { %v2526_v41 = vmul.f32 %v6421_v40, %v5392_v33 }
 0x224   : > { %2538 = vrot.lane.b32.xlu1 %v2527_v37, %s5431_s28 }
 0x225   : > { %2536 = vrot.lane.b32.xlu0 %v2526_v41, %s5431_s28  ;;  %v4018_v41 = vld [vmem:[%s6756_s4 + $0xc0] sm:$0xff] }
 0x229   : > { %2469 = vrot.lane.b32.xlu0 %v3987_v42, %s5432_s9  ;;  %v4019_v42 = vld [vmem:[%s6756_s4 + $0xc8] sm:$0xff] }
 0x22a   : > { %v5137_v56 = vpack.c.bf16 %v4019_v42, %v4018_v41  ;;  %v4075_v41 = vld [vmem:[%s6756_s4 + $0x208] sm:$0xff] }
 0x292   : > { %v2535_v43 = vpop.permute.xlu1 %2534 }
 0x293   : > { %2545 = vst.msk [vmem:[#allocation2 + $0x21] sm:$0xff] %vm307_vm3, %v2535_v43  ;;  %v2533_v15 = vpop.permute.xlu0 %2532 }
 0x294   : > { %2544 = vst.msk [vmem:[#allocation2 + $0x11] sm:$0xff] %vm307_vm3, %v2533_v15  ;;  %v5233_v15 = vpack.c.bf16 %v4087_v32, %v4086_v39  ;;  %v4072_v39 = vld [vmem:[%s6756_s4 + $0x1f0] sm:$0xff]  ;;  %v4073_v32 = vld [vmem:[%s6756_s4 + $0x1f8] sm:$0xff] }
 0x296   : > { %v2539_v44 = vpop.permute.xlu1 %2538 }
 0x297   : > { %2547 = vst.msk [vmem:[#allocation2 + $0x41] sm:$0xff] %vm307_vm3, %v2539_v44  ;;  %v2537_v46 = vpop.permute.xlu0 %2536 }
 0x298   : > { %2546 = vst.msk [vmem:[#allocation2 + $0x31] sm:$0xff] %vm307_vm3, %v2537_v46  ;;  %v4088_v46 = vld [vmem:[%s6756_s4 + $0x250] sm:$0xff] }
 0x299   : > { %v5237_v14 = vpack.c.bf16 %v4089_v47, %v4088_v46  ;;  %v4077_v46 = vld [vmem:[%s6756_s4 + $0x218] sm:$0xff]  ;;  %v4078_v47 = vld [vmem:[%s6756_s4 + $0x220] sm:$0xff] }
 0x29a   : > { %v6454_v52 = vld [vmem:[#allocation2 + $0x20] sm:$0xff] }
 0x29b   : > { %v2549_v5 = vld [vmem:[#allocation2 + $0x10] sm:$0xff]  ;;  %v6539_v43 = vld [vmem:[#allocation2 + $0x21] sm:$0xff] }
 0x29c   : > { %4624 = vmatmul.mubr.msk.f32.vlgmr.msra.gmra.mrb[8].mxu0 %vm272_vm0, %v2549_v5  ;;  %4701 = vmatprep.mubr.msk.f32.mxu1 %vm272_vm0, %v2549_v5  ;;  %v6488_v4 = vld [vmem:[#allocation2 + $0x12] sm:$0xff]  ;;  %v6543_v44 = vld [vmem:[#allocation2 + $0x22] sm:$0xff] }
 0x29d   : > { %5112 = vmatpush3.bf16.msra.mxu0 %v5109_v23  ;;  %4626 = vmatprep.mubr.msk.f32.mxu0 %vm272_vm0, %v6454_v52  ;;  %v5205_v23 = vpack.c.bf16 %v4065_v18, %v4064_v16  ;;  %v6529_v37 = vld [vmem:[#allocation2 + $0x11] sm:$0xff]  ;;  %v4046_v18 = vld [vmem:[%s6756_s4 + $0x160] sm:$0xff] }
 0x29e   : > { %4702 = vmatmul.mubr.msk.f32.vlgmr.msra.gmra.mrb[12].mxu1 %vm272_vm0, %v6454_v52  ;;  %5114 = vmatprep.subr.bf16.mxu0 %v5113_v54  ;;  %v6478_v1 = vld [vmem:[#allocation2 + $0x40] sm:$0xff]  ;;  %v4020_v5 = vld [vmem:[%s6756_s4 + $0xd0] sm:$0xff] }
 0x29f   : > { %5192 = vmatpush3.bf16.msra.mxu1 %v5189_v27  ;;  %v6466_v62 = vld [vmem:[#allocation2 + $0x30] sm:$0xff]  ;;  %v6567_v55 = vld [vmem:[#allocation2 + $0x42] sm:$0xff] }
 0x2a0   : > { %4627 = vmatmul.mubr.msk.f32.gmra.mrb[10].mxu0 %vm272_vm0, %v6466_v62  ;;  %4704 = vmatprep.mubr.msk.f32.mxu1 %vm272_vm0, %v6466_v62  ;;  %v4016_v27 = vld [vmem:[%s6756_s4 + $0xb0] sm:$0xff]  ;;  %v3361_v20 = vld [vmem:[#allocation2 + $0x41] sm:$0xff] }
 0x2a1   : > { %5116 = vmatpush3.bf16.msra.mxu0 %v5113_v54  ;;  %5194 = vmatprep.subr.bf16.mxu1 %v5193_v48  ;;  %v5133_v33 = vpack.c.bf16 %v4017_v28, %v4016_v27  ;;  %v6553_v49 = vld [vmem:[#allocation2 + $0x32] sm:$0xff]  ;;  %v4070_v28 = vld [vmem:[%s6756_s4 + $0x1e0] sm:$0xff] }
 0x2a2   : > { %4705 = vmatmul.mubr.msk.f32.gmra.mrb[14].mxu1 %vm272_vm0, %v6478_v1  ;;  %5118 = vmatprep.subr.bf16.mxu0 %v5117_v7  ;;  %v6557_v51 = vld [vmem:[#allocation2 + $0x31] sm:$0xff] }
 0x2a3   : > { %5196 = vmatpush3.bf16.msra.mxu1 %v5193_v48  ;;  %4753 = vmatprep.mubr.msk.f32.mxu1 %vm272_vm0, %v6488_v4  ;;  %v4021_v54 = vld [vmem:[%s6756_s4 + $0xd8] sm:$0xff]  ;;  %v4090_v48 = vld [vmem:[%s6756_s4 + $0x260] sm:$0xff] }
 0x2a4   : > { %5198 = vmatprep.subr.bf16.mxu1 %v5197_v0  ;;  %4649 = vmatprep.mubr.msk.f32.mxu0 %vm272_vm0, %v5421_v30  ;;  %v5141_v61 = vpack.c.bf16 %v4021_v54, %v4020_v5  ;;  %v5241_v63 = vpack.c.bf16 %v4091_v59, %v4090_v48  ;;  %v4045_v30 = vld [vmem:[%s6756_s4 + $0x158] sm:$0xff]  ;;  %v4098_v5 = vld [vmem:[%s6756_s4 + $0x280] sm:$0xff] }
 0x2a5   : > { %5120 = vmatpush3.bf16.msra.mxu0 %v5117_v7  ;;  %v4022_v7 = vld [vmem:[%s6756_s4 + $0xe0] sm:$0xff]  ;;  %v4101_v48 = vld [vmem:[%s6756_s4 + $0x298] sm:$0xff] }
 0x2a6   : > { %5122 = vmatprep.subr.bf16.mxu0 %v5121_v8  ;;  %v5145_v2 = vpack.c.bf16 %v4023_v58, %v4022_v7  ;;  %v4103_v7 = vld [vmem:[%s6756_s4 + $0x2a8] sm:$0xff] }
 0x2a7   : > { %5200 = vmatpush3.bf16.msra.mxu1 %v5197_v0  ;;  %v4093_v0 = vld [vmem:[%s6756_s4 + $0x278] sm:$0xff] }
 0x2a8   : > { %5202 = vmatprep.subr.bf16.mxu1 %v5201_v57 }
 0x2a9   : > { %5124 = vmatpush3.bf16.msra.mxu0 %v5121_v8  ;;  %v4043_v8 = vld [vmem:[%s6756_s4 + $0x148] sm:$0xff] }
 0x2aa   : > { %5126 = vmatprep.subr.bf16.mxu0 %v5125_v19  ;;  %v5169_v10 = vpack.c.bf16 %v4043_v8, %v4042_v3 }
 0x2ab   : > { %5204 = vmatpush3.bf16.msra.mxu1 %v5201_v57  ;;  %v4044_v57 = vld [vmem:[%s6756_s4 + $0x150] sm:$0xff] }
 0x2ac   : > { %5206 = vmatprep.subr.bf16.mxu1 %v5205_v23  ;;  %v5173_v16 = vpack.c.bf16 %v4045_v30, %v4044_v57 }
 0x2ad   : > { %5128 = vmatpush3.bf16.msra.mxu0 %v5125_v19  ;;  %v4047_v19 = vld [vmem:[%s6756_s4 + $0x168] sm:$0xff] }
 0x2ae   : > { %5130 = vmatprep.subr.bf16.mxu0 %v5129_v26  ;;  %v5177_v22 = vpack.c.bf16 %v4047_v19, %v4046_v18 }
 0x2af   : > { %5208 = vmatpush3.bf16.msra.mxu1 %v5205_v23  ;;  %v4048_v23 = vld [vmem:[%s6756_s4 + $0x170] sm:$0xff] }
 0x2b0   : > { %4650 = vmatmul.mubr.msk.f32.vlgmr.msra.gmra.mrb[12].mxu0 %vm272_vm0, %v6529_v37  ;;  %5230 = vmatprep.subr.bf16.mxu1 %v5229_v29 }
 0x2b1   : > { %4652 = vmatprep.mubr.msk.f32.mxu0 %vm272_vm0, %v6539_v43  ;;  %5132 = vmatpush3.bf16.msra.mxu0 %v5129_v26  ;;  %v4051_v26 = vld [vmem:[%s6756_s4 + $0x188] sm:$0xff] }
 0x2b2   : > { %4754 = vmatmul.mubr.msk.f32.vlgmr.msra.gmra.mrb[16].mxu1 %vm272_vm0, %v6543_v44  ;;  %5134 = vmatprep.subr.bf16.mxu0 %v5133_v33  ;;  %v5185_v27 = vpack.c.bf16 %v4051_v26, %v4050_v25 }
 0x2b3   : > { %4756 = vmatprep.mubr.msk.f32.mxu1 %vm272_vm0, %v6553_v49  ;;  %5232 = vmatpush3.bf16.msra.mxu1 %v5229_v29  ;;  %v4071_v29 = vld [vmem:[%s6756_s4 + $0x1e8] sm:$0xff] }
 0x2b4   : > { %4653 = vmatmul.mubr.msk.f32.gmra.mrb[14].mxu0 %vm272_vm0, %v6557_v51  ;;  %5234 = vmatprep.subr.bf16.mxu1 %v5233_v15 }
 0x2b5   : > { %5136 = vmatpush3.bf16.msra.mxu0 %v5133_v33  ;;  %4675 = vmatprep.mubr.msk.f32.mxu0 %vm272_vm0, %v6040_v13  ;;  %v4092_v13 = vld [vmem:[%s6756_s4 + $0x270] sm:$0xff]  ;;  %v5213_v33 = vpack.c.bf16 %v4073_v32, %v4072_v39 }
 0x2b6   : > { %4757 = vmatmul.mubr.msk.f32.gmra.mrb[18].mxu1 %vm272_vm0, %v6567_v55  ;;  %5138 = vmatprep.subr.bf16.mxu0 %v5137_v56  ;;  %v5245_v9 = vpack.c.bf16 %v4093_v0, %v4092_v13  ;;  %v4105_v13 = vld [vmem:[%s6756_s4 + $0x2b8] sm:$0xff]  ;;  %v4107_v0 = vld [vmem:[%s6756_s4 + $0x2c8] sm:$0xff] }
 0x2b7   : > { %5236 = vmatpush3.bf16.msra.mxu1 %v5233_v15  ;;  %4805 = vmatprep.mubr.msk.f32.mxu1 %vm272_vm0, %v6539_v43  ;;  %v4076_v15 = vld [vmem:[%s6756_s4 + $0x210] sm:$0xff] }
 0x2b8   : > { %5238 = vmatprep.subr.bf16.mxu1 %v5237_v14 }
 0x2b9   : > { %5140 = vmatpush3.bf16.msra.mxu0 %v5137_v56  ;;  %v4079_v56 = vld [vmem:[%s6756_s4 + $0x228] sm:$0xff] }
 0x2ba   : > { %5142 = vmatprep.subr.bf16.mxu0 %v5141_v61 }
 0x2bb   : > { %5240 = vmatpush3.bf16.msra.mxu1 %v5237_v14  ;;  %v4100_v14 = vld [vmem:[%s6756_s4 + $0x290] sm:$0xff] }
 0x2bc   : > { %5242 = vmatprep.subr.bf16.mxu1 %v5241_v63  ;;  %v5253_v59 = vpack.c.bf16 %v4101_v48, %v4100_v14 }
 0x2bd   : > { %5144 = vmatpush3.bf16.msra.mxu0 %v5141_v61  ;;  %v4102_v61 = vld [vmem:[%s6756_s4 + $0x2a0] sm:$0xff] }
 0x2be   : > { %5146 = vmatprep.subr.bf16.mxu0 %v5145_v2  ;;  %v5257_v58 = vpack.c.bf16 %v4103_v7, %v4102_v61 }
 0x2bf   : > { %5244 = vmatpush3.bf16.msra.mxu1 %v5241_v63  ;;  %v4104_v63 = vld [vmem:[%s6756_s4 + $0x2b0] sm:$0xff] }
 0x2c0   : > { %5246 = vmatprep.subr.bf16.mxu1 %v5245_v9 }
 0x2c1   : > { %5148 = vmatpush3.bf16.msra.mxu0 %v5145_v2 }
 0x2c2   : > { %5170 = vmatprep.subr.bf16.mxu0 %v5169_v10 }
 0x2c3   : > { %5248 = vmatpush3.bf16.msra.mxu1 %v5245_v9 }
 0x2c4   : > { %4676 = vmatmul.mubr.msk.f32.vlgmr.msra.gmra.mrb[16].mxu0 %vm272_vm0, %v6488_v4  ;;  %v4049_v4 = vld [vmem:[%s6756_s4 + $0x178] sm:$0xff] }
 0x2c5   : > { %4678 = vmatprep.mubr.msk.f32.mxu0 %vm272_vm0, %v6543_v44  ;;  %5172 = vmatpush3.bf16.msra.mxu0 %v5169_v10  ;;  %v5181_v24 = vpack.c.bf16 %v4049_v4, %v4048_v23 }
 0x2c6   : > { %4806 = vmatmul.mubr.msk.f32.vlgmr.msra.gmra.mrb[20].mxu1 %vm272_vm0, %v6557_v51  ;;  %5174 = vmatprep.subr.bf16.mxu0 %v5173_v16 }
 0x2c7   : > { %4808 = vmatprep.mubr.msk.f32.mxu1 %vm272_vm0, %v3361_v20 }
 0x2c8   : > { %4679 = vmatmul.mubr.msk.f32.gmra.mrb[18].mxu0 %vm272_vm0, %v6553_v49 }
 0x2c9   : > { %5176 = vmatpush3.bf16.msra.mxu0 %v5173_v16  ;;  %4727 = vmatprep.mubr.msk.f32.mxu0 %vm272_vm0, %v6529_v37  ;;  %v4074_v37 = vld [vmem:[%s6756_s4 + $0x200] sm:$0xff] }
 0x2ca   : > { %5178 = vmatprep.subr.bf16.mxu0 %v5177_v22  ;;  %4809 = vmatmul.mubr.msk.f32.gmra.mrb[22].mxu1 %vm272_vm0, %v6285_v60  ;;  %v5209_v60 = vpack.c.bf16 %v4071_v29, %v4070_v28  ;;  %v5217_v42 = vpack.c.bf16 %v4075_v41, %v4074_v37 }
 0x2cd   : > { %5180 = vmatpush3.bf16.msra.mxu0 %v5177_v22 }
 0x2ce   : > { %5182 = vmatprep.subr.bf16.mxu0 %v5181_v24 }
 0x2d1   : > { %5184 = vmatpush3.bf16.msra.mxu0 %v5181_v24 }
 0x2d2   : > { %5186 = vmatprep.subr.bf16.mxu0 %v5185_v27 }
 0x2d5   : > { %5188 = vmatpush3.bf16.msra.mxu0 %v5185_v27 }
 0x2d6   : > { %5210 = vmatprep.subr.bf16.mxu0 %v5209_v60 }
 0x2d8   : > { %4728 = vmatmul.mubr.msk.f32.vlgmr.msra.gmra.mrb[20].mxu0 %vm272_vm0, %v6539_v43  ;;  %v5221_v43 = vpack.c.bf16 %v4077_v46, %v4076_v15 }
 0x2d9   : > { %4730 = vmatprep.mubr.msk.f32.mxu0 %vm272_vm0, %v6557_v51  ;;  %5212 = vmatpush3.bf16.msra.mxu0 %v5209_v60  ;;  %v5225_v51 = vpack.c.bf16 %v4079_v56, %v4078_v47 }
 0x2da   : > { %5214 = vmatprep.subr.bf16.mxu0 %v5213_v33 }
 0x2dc   : > { %4731 = vmatmul.mubr.msk.f32.gmra.mrb[22].mxu0 %vm272_vm0, %v3361_v20 }
 0x2dd   : > { %5216 = vmatpush3.bf16.msra.mxu0 %v5213_v33  ;;  %4779 = vmatprep.mubr.msk.f32.mxu0 %vm272_vm0, %v6454_v52  ;;  %v4099_v52 = vld [vmem:[%s6756_s4 + $0x288] sm:$0xff] }
 0x2de   : > { %5218 = vmatprep.subr.bf16.mxu0 %v5217_v42  ;;  %v5249_v54 = vpack.c.bf16 %v4099_v52, %v4098_v5 }
 0x2e1   : > { %5220 = vmatpush3.bf16.msra.mxu0 %v5217_v42 }
 0x2e2   : > { %5222 = vmatprep.subr.bf16.mxu0 %v5221_v43 }
 0x2e5   : > { %5224 = vmatpush3.bf16.msra.mxu0 %v5221_v43 }
 0x2e6   : > { %5226 = vmatprep.subr.bf16.mxu0 %v5225_v51 }
 0x2e9   : > { %5228 = vmatpush3.bf16.msra.mxu0 %v5225_v51 }
 0x2ea   : > { %5250 = vmatprep.subr.bf16.mxu0 %v5249_v54 }
 0x2ec   : > { %4780 = vmatmul.mubr.msk.f32.vlgmr.msra.gmra.mrb[24].mxu0 %vm272_vm0, %v6466_v62  ;;  %v5261_v62 = vpack.c.bf16 %v4105_v13, %v4104_v63 }
 0x2ed   : > { %4782 = vmatprep.mubr.msk.f32.mxu0 %vm272_vm0, %v6478_v1  ;;  %5252 = vmatpush3.bf16.msra.mxu0 %v5249_v54  ;;  %v4106_v1 = vld [vmem:[%s6756_s4 + $0x2c0] sm:$0xff] }
 0x2ee   : > { %5254 = vmatprep.subr.bf16.mxu0 %v5253_v59  ;;  %v5265_v2 = vpack.c.bf16 %v4107_v0, %v4106_v1 }
 0x2f0   : > { %4783 = vmatmul.mubr.msk.f32.gmra.mrb[26].mxu0 %vm272_vm0, %v6245_v36 }
 0x2f1   : > { %5256 = vmatpush3.bf16.msra.mxu0 %v5253_v59  ;;  %4831 = vmatprep.mubr.msk.f32.mxu0 %vm272_vm0, %v6543_v44 }
 0x2f2   : > { %5258 = vmatprep.subr.bf16.mxu0 %v5257_v58 }
 0x2f5   : > { %5260 = vmatpush3.bf16.msra.mxu0 %v5257_v58 }
 0x2f6   : > { %5262 = vmatprep.subr.bf16.mxu0 %v5261_v62 }
 0x2f9   : > { %5264 = vmatpush3.bf16.msra.mxu0 %v5261_v62 }
 0x2fa   : > { %5266 = vmatprep.subr.bf16.mxu0 %v5265_v2 }
 0x2fd   : > { %5268 = vmatpush3.bf16.msra.mxu0 %v5265_v2 }
 0x300   : > { %4832 = vmatmul.mubr.msk.f32.vlgmr.msra.gmra.mrb[28].mxu0 %vm272_vm0, %v6553_v49 }
 0x301   : > { %4834 = vmatprep.mubr.msk.f32.mxu0 %vm272_vm0, %v6567_v55 }
 0x304   : > { %4835 = vmatmul.mubr.msk.f32.gmra.mrb[30].mxu0 %vm272_vm0, %v6307_v35 }
 0x36f   : > { %v4625_v36 = vpop.f32.mrb[8].mxu0 }
 0x370   : > { %v2660_v44 = vadd.f32 %v6313_v12, %v4625_v36  ;;  %v2640_v3 = vpop.f32.mrb[9].mxu0 }
 0x371   : > { %v2659_v8 = vadd.f32 %v6311_v6, %v2640_v3  ;;  %v4703_v9 = vpop.f32.mrb[12].mxu1 }
 0x372   : > { %v2988_v10 = vpop.f32.mrb[13].mxu1 }
 0x373   : > { %v4628_v57 = vpop.f32.mrb[10].mxu0 }
 0x374   : > { %v2662_v30 = vadd.f32 %v6317_v21, %v4628_v57  ;;  %v2650_v16 = vpop.f32.mrb[11].mxu0 }
 0x375   : > { %v2661_v49 = vadd.f32 %v6315_v17, %v2650_v16  ;;  %v4706_v18 = vpop.f32.mrb[14].mxu1 }
 0x376   : > { %v2998_v19 = vpop.f32.mrb[15].mxu1 }
 0x383   : > { %v4651_v55 = vpop.f32.mrb[12].mxu0 }
 0x384   : > { %v2776_v20 = vadd.f32 %v4651_v55, %v2660_v44  ;;  %v2756_v22 = vpop.f32.mrb[13].mxu0 }
 0x385   : > { %v2775_v35 = vadd.f32 %v2756_v22, %v2659_v8  ;;  %v4755_v23 = vpop.f32.mrb[16].mxu1 }
 0x386   : > { %v3220_v4 = vpop.f32.mrb[17].mxu1 }
 0x387   : > { %v4654_v12 = vpop.f32.mrb[14].mxu0 }
 0x388   : > { %v2778_v24 = vadd.f32 %v4654_v12, %v2662_v30  ;;  %v2766_v25 = vpop.f32.mrb[15].mxu0 }
 0x389   : > { %v2777_v6 = vadd.f32 %v2766_v25, %v2661_v49  ;;  %v4758_v26 = vpop.f32.mrb[18].mxu1  ;;  %v4112_v49 = vld [vmem:[%s6757_s5 + $0x2] ss:$0 sm:$0xff] }
 0x38a   : > { %v3230_v27 = vpop.f32.mrb[19].mxu1 }
 0x397   : > { %v4677_v28 = vpop.f32.mrb[16].mxu0 }
 0x398   : > { %v2892_v29 = vadd.f32 %v4677_v28, %v2776_v20  ;;  %v2872_v21 = vpop.f32.mrb[17].mxu0 }
 0x399   : > { %v2891_v60 = vadd.f32 %v2872_v21, %v2775_v35  ;;  %v4807_v39 = vpop.f32.mrb[20].mxu1 }
 0x39a   : > { %v3452_v17 = vpop.f32.mrb[21].mxu1  ;;  %v3008_v32 = vadd.f32 %v4703_v9, %v2892_v29 }
 0x39b   : > { %v4680_v33 = vpop.f32.mrb[18].mxu0  ;;  %v3007_v37 = vadd.f32 %v2988_v10, %v2891_v60 }
 0x39c   : > { %v2894_v41 = vadd.f32 %v4680_v33, %v2778_v24  ;;  %v2882_v42 = vpop.f32.mrb[19].mxu0 }
 0x39d   : > { %v2893_v15 = vadd.f32 %v2882_v42, %v2777_v6  ;;  %v4810_v46 = vpop.f32.mrb[22].mxu1 }
 0x39e   : > { %v3010_v43 = vadd.f32 %v4706_v18, %v2894_v41  ;;  %v3462_v47 = vpop.f32.mrb[23].mxu1 }
 0x39f   : > { %v3009_v56 = vadd.f32 %v2998_v19, %v2893_v15 }
 0x3ab   : > { %v4729_v51 = vpop.f32.mrb[20].mxu0 }
 0x3ac   : > { %v3124_v5 = vadd.f32 %v4729_v51, %v3008_v32  ;;  %v3104_v52 = vpop.f32.mrb[21].mxu0 }
 0x3ad   : > { %v3123_v54 = vadd.f32 %v3104_v52, %v3007_v37 }
 0x3ae   : > { %v3240_v14 = vadd.f32 %v4755_v23, %v3124_v5 }
 0x3af   : > { %v4732_v48 = vpop.f32.mrb[22].mxu0  ;;  %v3239_v59 = vadd.f32 %v3220_v4, %v3123_v54 }
 0x3b0   : > { %v3126_v61 = vadd.f32 %v4732_v48, %v3010_v43  ;;  %v3114_v7 = vpop.f32.mrb[23].mxu0 }
 0x3b1   : > { %v3125_v58 = vadd.f32 %v3114_v7, %v3009_v56 }
 0x3b2   : > { %v3242_v63 = vadd.f32 %v4758_v26, %v3126_v61 }
 0x3b3   : > { %v3241_v13 = vadd.f32 %v3230_v27, %v3125_v58 }
 0x3bf   : > { %v4781_v62 = vpop.f32.mrb[24].mxu0 }
 0x3c0   : > { %v3356_v1 = vadd.f32 %v4781_v62, %v3240_v14  ;;  %v3336_v0 = vpop.f32.mrb[25].mxu0 }
 0x3c1   : > { %v3355_v2 = vadd.f32 %v3336_v0, %v3239_v59 }
 0x3c2   : > { %v3472_v36 = vadd.f32 %v4807_v39, %v3356_v1 }
 0x3c3   : > { %v4784_v44 = vpop.f32.mrb[26].mxu0  ;;  %v3471_v3 = vadd.f32 %v3452_v17, %v3355_v2  ;;  %v2470_v17 = vpop.permute.xlu0 %2469 }
 0x3c4   : > { %v3358_v8 = vadd.f32 %v4784_v44, %v3242_v63  ;;  %v3346_v9 = vpop.f32.mrb[27].mxu0  ;;  %v2473_v32 = vadd.f32 %v2470_v17, %v6358_v38  ;;  %v2472_v33 = vadd.f32 %v2470_v17, %v6360_v45  ;;  %v2475_v37 = vadd.f32 %v2470_v17, %v6364_v50 }
 0x3c5   : > { %v3357_v10 = vadd.f32 %v3346_v9, %v3241_v13  ;;  %v2474_v42 = vadd.f32 %v2470_v17, %v6366_v53 }
 0x3c6   : > { %v3474_v57 = vadd.f32 %v4810_v46, %v3358_v8  ;;  %v3993_v41 = vmul.f32 -1.442695, %v2473_v32  ;;  %v3992_v15 = vmul.f32 -1.442695, %v2472_v33  ;;  %v3995_v46 = vmul.f32 -1.442695, %v2475_v37 }
 0x3c7   : > { %v3473_v30 = vadd.f32 %v3462_v47, %v3357_v10  ;;  %v3994_v43 = vmul.f32 -1.442695, %v2474_v42 }
 0x3d3   : > { %v4833_v16 = vpop.f32.mrb[28].mxu0 }
 0x3d4   : > { %v3588_v18 = vadd.f32 %v4833_v16, %v3472_v36  ;;  %v3568_v19 = vpop.f32.mrb[29].mxu0 }
 0x3d5   : > { %v3587_v55 = vadd.f32 %v3568_v19, %v3471_v3 }
 0x3d6   : > { %v3597_v20 = vadd.f32 %v4112_v49, %v3588_v18 }
 0x3d7   : > { %v3596_v22 = vadd.f32 %v4112_v49, %v3587_v55  ;;  %v4836_v35 = vpop.f32.mrb[30].mxu0 }
 0x3d8   : > { %5393 = vtanh.f32 %v3597_v20  ;;  %v3590_v23 = vadd.f32 %v4836_v35, %v3474_v57  ;;  %v3578_v4 = vpop.f32.mrb[31].mxu0 }
 0x3d9   : > { %5395 = vtanh.f32 %v3596_v22  ;;  %v3589_v12 = vadd.f32 %v3578_v4, %v3473_v30 }
 0x3da   : > { %v3599_v24 = vadd.f32 %v4112_v49, %v3590_v23 }
 0x3db   : > { %v3598_v25 = vadd.f32 %v4112_v49, %v3589_v12 }
 0x3dc   : > { %5397 = vtanh.f32 %v3599_v24 }
 0x3dd   : > { %5399 = vtanh.f32 %v3598_v25 }
 0x3de   : > { %5401 = vpow2.f32 %v3993_v41 }
 0x3df   : > { %5403 = vpow2.f32 %v3992_v15 }
 0x3e0   : > { %5405 = vpow2.f32 %v3995_v46 }
 0x3e1   : > { %5407 = vpow2.f32 %v3994_v43 }
 0x3e2   : > { %v5394_v6 = vpop.eup %5393 }
 0x3e3   : > { %v5396_v26 = vpop.eup %5395  ;;  %v3605_v27 = vsub.f32 %v5394_v6, %v6407_v11 }
 0x3e4   : > { %v3604_v28 = vsub.f32 %v5396_v26, %v6411_v31 }
 0x3e5   : > { %3614 = vrot.lane.b32.xlu0 %v3605_v27, %s5432_s9 }
 0x3e6   : > { %v5398_v29 = vpop.eup %5397  ;;  %3612 = vrot.lane.b32.xlu1 %v3604_v28, %s5432_s9 }
 0x3e7   : > { %v5400_v21 = vpop.eup %5399  ;;  %v3607_v60 = vsub.f32 %v5398_v29, %v6417_v34 }
 0x3e8   : > { %v3606_v39 = vsub.f32 %v5400_v21, %v6421_v40  ;;  %v5402_v47 = vpop.eup %5401 }
 0x3e9   : > { %3618 = vrot.lane.b32.xlu0 %v3607_v60, %s5432_s9  ;;  %v5404_v56 = vpop.eup %5403  ;;  %v2513_v51 = vadd.f32 1.0, %v5402_v47 }
 0x3ea   : > { %3616 = vrot.lane.b32.xlu1 %v3606_v39, %s5432_s9  ;;  %v5406_v5 = vpop.eup %5405  ;;  %v2512_v52 = vadd.f32 1.0, %v5404_v56 }
 0x3eb   : > { %v5408_v38 = vpop.eup %5407  ;;  %v2515_v54 = vadd.f32 1.0, %v5406_v5  ;;  %5409 = vrcp.f32 %v2513_v51 }
 0x3ec   : > { %v2514_v45 = vadd.f32 1.0, %v5408_v38  ;;  %5411 = vrcp.f32 %v2512_v52 }
 0x3ed   : > { %5413 = vrcp.f32 %v2515_v54 }
 0x3ee   : > { %5415 = vrcp.f32 %v2514_v45 }
 0x3f5   : > { %v5410_v50 = vpop.eup %5409 }
 0x3f6   : > { %v5412_v14 = vpop.eup %5411 }
 0x3f7   : > { %v5414_v7 = vpop.eup %5413 }
 0x3f8   : > { %v5416_v63 = vpop.eup %5415 }
 0x457   : > { %v3615_v53 = vpop.permute.xlu0 %3614 }
 0x458   : > { %v3625_v48 = vmul.f32 %v5410_v50, %v3615_v53  ;;  %v3613_v59 = vpop.permute.xlu1 %3612 }
 0x459   : > { %v3624_v61 = vmul.f32 %v5412_v14, %v3613_v59 }
 0x45a   : > { %3634 = vrot.lane.b32.xlu0 %v3625_v48, %s5432_s9 }
 0x45b   : > { %3632 = vrot.lane.b32.xlu1 %v3624_v61, %s5432_s9  ;;  %v3619_v58 = vpop.permute.xlu0 %3618 }
 0x45c   : > { %v3627_v13 = vmul.f32 %v5414_v7, %v3619_v58  ;;  %v3617_v62 = vpop.permute.xlu1 %3616 }
 0x45d   : > { %v3626_v1 = vmul.f32 %v5416_v63, %v3617_v62 }
 0x45e   : > { %3638 = vrot.lane.b32.xlu0 %v3627_v13, %s5432_s9 }
 0x45f   : > { %3636 = vrot.lane.b32.xlu1 %v3626_v1, %s5432_s9 }
 0x4cc   : > { %v3635_v0 = vpop.permute.xlu0 %3634 }
 0x4cd   : > { %v3645_v2 = vadd.f32 %v6407_v11, %v3635_v0  ;;  %v3633_v36 = vpop.permute.xlu1 %3632 }
 0x4ce   : > { %v3644_v44 = vadd.f32 %v6411_v31, %v3633_v36 }
 0x4cf   : > { %3650 = vst.msk [vmem:[%s271_s7 + $0x8] sm:$0xff] %vm3648_vm4, %v3645_v2 }
 0x4d0   : > { %3649 = vst.msk [vmem:[%s271_s7] sm:$0xff] %vm3648_vm4, %v3644_v44  ;;  %v3639_v3 = vpop.permute.xlu0 %3638 }
 0x4d1   : > { %v3647_v8 = vadd.f32 %v6417_v34, %v3639_v3  ;;  %v3637_v9 = vpop.permute.xlu1 %3636 }
 0x4d2   : > { %v3646_v10 = vadd.f32 %v6421_v40, %v3637_v9 }
 0x4d3   : > { %3652 = vst.msk [vmem:[%s271_s7 + $0x18] sm:$0xff] %vm3648_vm4, %v3647_v8 }
 0x4d4   : > { %3651 = vst.msk [vmem:[%s271_s7 + $0x10] sm:$0xff] %vm3648_vm4, %v3646_v10 }
 0x4d5 PF: > { %s16_s21 = sadd.s32 1, %s5428_s21  }
 0x4d6   : > { %p13_p4 = scmp.ge.s32.totalorder %s16_s21, 4  }
 0x4d8   :  { %15 = sbr.rel (!%p13_p4) target bundleno = 1 (0x1), region = 105 }

</bundles_post_ra>
